<compile_context>
chip_gen: v6e
topology: v6e:2x2x1
jax: 0.10.0
libtpu: 0.0.40
codegen_flags: <defaults>
</compile_context>

<pallas_src>
import functools
import numpy as np
import jax
import jax.numpy as jnp
from jax.experimental import pallas as pl
from jax.experimental.pallas import tpu as pltpu


# ----------------------------- in-kernel helpers --------------------------- #

def _layer_norm(x, g, b, eps=1e-6):
    # One-pass stats: both reductions can issue concurrently on the XLU.
    n = x.shape[-1]
    s1 = jnp.sum(x, axis=-1, keepdims=True)
    s2 = jnp.sum(x * x, axis=-1, keepdims=True)
    mean = s1 * (1.0 / n)
    var = s2 * (1.0 / n) - mean * mean
    return (x - mean) * jax.lax.rsqrt(var + eps) * g + b


def _softmax_rows(s):
    s = s - jnp.max(s, axis=-1, keepdims=True)
    e = jnp.exp(s)
    denom = jnp.sum(e, axis=-1, keepdims=True)
    return e * pl.reciprocal(denom, approx=True)


def _attend_heads(q_all, k_all, v_all, bias, n_head, d_k, d_v):
    """Per-head scaled-dot attention from lane-fused projections."""
    heads = []
    for h in range(n_head):                        # static unroll, lane slices
        q = q_all[:, h * d_k:(h + 1) * d_k]
        k = k_all[:, h * d_k:(h + 1) * d_k]
        v = v_all[:, h * d_v:(h + 1) * d_v]
        s = jax.lax.dot_general(q, k, (((1,), (1,)), ((), ())),
                                preferred_element_type=jnp.float32) + bias
        a = _softmax_rows(s)
        heads.append(jnp.dot(a, v, preferred_element_type=jnp.float32))
    return jnp.concatenate(heads, axis=-1)         # (rows, n_head*d_v)


def _self_mha(x, bias, wqkv, wo, g, b, n_head, d_k, d_v):
    # ONE wide (rows,D)@(D, 3*nh*dk) projection instead of 3*nh narrow ones.
    qkv = jnp.dot(x, wqkv, preferred_element_type=jnp.float32)
    nqk = n_head * d_k
    o = _attend_heads(qkv[:, :nqk], qkv[:, nqk:2 * nqk], qkv[:, 2 * nqk:],
                      bias, n_head, d_k, d_v)
    o = jnp.dot(o, wo, preferred_element_type=jnp.float32)    # single out-proj
    return _layer_norm(o + x, g, b)


def _cross_mha(x, enc, bias, wq, wkv, wo, g, b, n_head, d_k, d_v):
    q_all = jnp.dot(x, wq, preferred_element_type=jnp.float32)
    kv = jnp.dot(enc, wkv, preferred_element_type=jnp.float32)
    nqk = n_head * d_k
    o = _attend_heads(q_all, kv[:, :nqk], kv[:, nqk:], bias, n_head, d_k, d_v)
    o = jnp.dot(o, wo, preferred_element_type=jnp.float32)
    return _layer_norm(o + x, g, b)


def _ffn(x, w1, b1, w2, b2, g, b):
    h = jnp.dot(x, w1, preferred_element_type=jnp.float32) + b1
    h = jnp.maximum(h, 0.0)                        # ReLU
    o = jnp.dot(h, w2, preferred_element_type=jnp.float32) + b2
    return _layer_norm(o + x, g, b)


# ------------------------------ fused kernel ------------------------------- #

def decoder_kernel(tok_ref, pos_ref, enc_ref, tbias_ref, sbias_ref, emb_ref,
                   ln0_g_ref, ln0_b_ref,
                   s_wqkv, s_wo, s_g, s_b,          # self-attention stacks
                   e_wq, e_wkv, e_wo, e_g, e_b,     # cross-attention stacks
                   f_w1, f_b1, f_w2, f_b2, f_g, f_b,  # FFN stacks
                   out_ref, *, n_layers, n_head, d_k, d_v, emb_scale):
    rows = out_ref.shape[0]                         # B * L_trg (batch folded)
    vocab = emb_ref.shape[0]

    # Embedding lookup as a one-hot matmul: avoids dynamic indexing and keeps
    # everything on the MXU; pad_idx row of the table is zero so padding
    # semantics of nn.Embedding(padding_idx=...) are preserved.
    ids = tok_ref[...]                              # (rows, 1) int32
    iota = jax.lax.broadcasted_iota(jnp.int32, (rows, vocab), 1)
    onehot = (iota == ids).astype(jnp.float32)      # (rows, vocab)
    x = jnp.dot(onehot, emb_ref[...], preferred_element_type=jnp.float32)
    if emb_scale != 1.0:
        x = x * emb_scale
    # TODO(synk): dropout(p=0.1) is identity in eval mode; not implemented.
    x = x + pos_ref[...]
    x = _layer_norm(x, ln0_g_ref[...], ln0_b_ref[...])

    enc = enc_ref[...]                              # (B*L_src, D)
    tbias = tbias_ref[...]                          # block-diag additive bias
    sbias = sbias_ref[...]

    for l in range(n_layers):                       # static unroll over layers
        x = _self_mha(x, tbias, s_wqkv[l], s_wo[l], s_g[l], s_b[l],
                      n_head, d_k, d_v)
        x = _cross_mha(x, enc, sbias, e_wq[l], e_wkv[l], e_wo[l],
                       e_g[l], e_b[l], n_head, d_k, d_v)
        x = _ffn(x, f_w1[l], f_b1[l], f_w2[l], f_b2[l], f_g[l], f_b[l])

    out_ref[...] = x
    # TODO(synk): a lane-dense (rows*D//128, 128) output slab would avoid
    # masked vst.msk stores, but the in-kernel relayout likely eats the win
    # at this size.


# ------------------------------ param packing ------------------------------ #

def pack_decoder_params(params, n_head, d_k, d_v):
    """One-time conversion of per-layer params into the fused-kernel layout.

    * fuses Q|K|V (self) and K|V (cross) along the output dim -> wide matmuls,
    * folds the 1/sqrt(d_k) temperature into W_q,
    * stacks everything along a leading n_layers axis.
    """
    inv_temp = jnp.float32(1.0 / np.sqrt(d_k))

    def stack(fn):
        return jnp.stack([fn(lp) for lp in params['layers']], axis=0)

    return dict(
        emb=params['emb'],
        pos=params['pos'],
        ln0_g=params['ln_g'], ln0_b=params['ln_b'],
        # self-attn: fused (D, nh*dk | nh*dk | nh*dv)
        slf_wqkv=stack(lambda lp: jnp.concatenate(
            [lp['slf']['wq'] * inv_temp, lp['slf']['wk'], lp['slf']['wv']],
            axis=1)),
        slf_wo=stack(lambda lp: lp['slf']['wo']),
        slf_g=stack(lambda lp: lp['slf']['g']),
        slf_b=stack(lambda lp: lp['slf']['b']),
        # cross-attn: WQ alone (acts on x), fused (D, nh*dk | nh*dv) on enc
        enc_wq=stack(lambda lp: lp['enc']['wq'] * inv_temp),
        enc_wkv=stack(lambda lp: jnp.concatenate(
            [lp['enc']['wk'], lp['enc']['wv']], axis=1)),
        enc_wo=stack(lambda lp: lp['enc']['wo']),
        enc_g=stack(lambda lp: lp['enc']['g']),
        enc_b=stack(lambda lp: lp['enc']['b']),
        ffn_w1=stack(lambda lp: lp['ffn']['w1']),
        ffn_b1=stack(lambda lp: lp['ffn']['b1']),
        ffn_w2=stack(lambda lp: lp['ffn']['w2']),
        ffn_b2=stack(lambda lp: lp['ffn']['b2']),
        ffn_g=stack(lambda lp: lp['ffn']['g']),
        ffn_b=stack(lambda lp: lp['ffn']['b']),
    )


# ------------------------------ decoder forward ----------------------------- #

@functools.partial(jax.jit,
                   static_argnames=("n_head", "d_k", "d_v", "d_model",
                                    "scale_emb"))
def decoder_forward(trg_seq, trg_mask, enc_output, src_mask, packed,
                    n_head, d_k, d_v, d_model, scale_emb=False):
    B, L = trg_seq.shape
    _, Ls, _ = enc_output.shape
    BL, BLs = B * L, B * Ls
    n_layers = packed['slf_wqkv'].shape[0]

    # Batch folded into rows: token ids, positional table and enc output.
    tok = trg_seq.reshape(BL, 1).astype(jnp.int32)
    pos_bl = jnp.tile(packed['pos'][0, :L, :], (B, 1))          # (BL, D)
    enc_flat = enc_output.reshape(BLs, d_model)

    # Block-diagonal additive mask biases (0 keep, -1e9 mask): computed once,
    # reused by every layer; cross-batch score entries are always masked.
    eye = jnp.eye(B, dtype=jnp.float32)
    tmask_bd = jnp.einsum('bc,bqk->bqck', eye,
                          trg_mask.astype(jnp.float32)).reshape(BL, BL)
    smask_bd = jnp.einsum('bc,bqk->bqck', eye,
                          src_mask.astype(jnp.float32)).reshape(BL, BLs)
    tbias = (tmask_bd - 1.0) * 1e9
    sbias = (smask_bd - 1.0) * 1e9

    emb_scale = float(d_model) ** 0.5 if scale_emb else 1.0
    kern = functools.partial(decoder_kernel, n_layers=n_layers, n_head=n_head,
                             d_k=d_k, d_v=d_v, emb_scale=emb_scale)

    out = pl.pallas_call(
        kern,
        out_shape=jax.ShapeDtypeStruct((BL, d_model), jnp.float32),
        compiler_params=pltpu.CompilerParams(
            vmem_limit_bytes=32 * 1024 * 1024),
    )(tok, pos_bl, enc_flat, tbias, sbias, packed['emb'],
      packed['ln0_g'], packed['ln0_b'],
      packed['slf_wqkv'], packed['slf_wo'], packed['slf_g'], packed['slf_b'],
      packed['enc_wq'], packed['enc_wkv'], packed['enc_wo'],
      packed['enc_g'], packed['enc_b'],
      packed['ffn_w1'], packed['ffn_b1'], packed['ffn_w2'], packed['ffn_b2'],
      packed['ffn_g'], packed['ffn_b'])
    return out.reshape(B, L, d_model)


# ----------------------- pure-JAX reference (check) ------------------------ #

def _ref_ln(x, g, b, eps=1e-6):
    m = jnp.mean(x, -1, keepdims=True)
    v = jnp.mean((x - m) ** 2, -1, keepdims=True)
    return (x - m) / jnp.sqrt(v + eps) * g + b


def _ref_mha(q, kv, mask, p, n_head, d_k, d_v):
    B, Lq, D = q.shape
    _, Lk, _ = kv.shape
    Q = (q @ p['wq']).reshape(B, Lq, n_head, d_k).transpose(0, 2, 1, 3)
    K = (kv @ p['wk']).reshape(B, Lk, n_head, d_k).transpose(0, 2, 1, 3)
    V = (kv @ p['wv']).reshape(B, Lk, n_head, d_v).transpose(0, 2, 1, 3)
    s = jnp.einsum('bhqd,bhkd->bhqk', Q, K) / (d_k ** 0.5)
    s = jnp.where(mask[:, None] == 0.0, -1e9, s)
    a = jax.nn.softmax(s, axis=-1)
    o = jnp.einsum('bhqk,bhkd->bhqd', a, V).transpose(0, 2, 1, 3).reshape(B, Lq, -1)
    o = o @ p['wo'] + q
    return _ref_ln(o, p['g'], p['b'])


def _ref_ffn(x, p):
    h = jnp.maximum(x @ p['w1'] + p['b1'], 0.0)
    o = h @ p['w2'] + p['b2'] + x
    return _ref_ln(o, p['g'], p['b'])


def ref_decoder(trg_seq, trg_mask, enc_output, src_mask, params,
                n_head, d_k, d_v, d_model):
    L_trg = trg_seq.shape[1]
    x = jnp.take(params['emb'], trg_seq, axis=0) + params['pos'][:, :L_trg, :]
    x = _ref_ln(x, params['ln_g'], params['ln_b'])
    for lp in params['layers']:
        x = _ref_mha(x, x, trg_mask, lp['slf'], n_head, d_k, d_v)
        x = _ref_mha(x, enc_output, src_mask, lp['enc'], n_head, d_k, d_v)
        x = _ref_ffn(x, lp['ffn'])
    return x


# --------------------------------- main ------------------------------------ #

def sinusoid_table(n_position, d_word_vec):
    pos = np.arange(n_position)[:, None]
    j = np.arange(d_word_vec)[None, :]
    angle = pos / np.power(10000, 2 * (j // 2) / d_word_vec)
    table = np.zeros_like(angle)
    table[:, 0::2] = np.sin(angle[:, 0::2])
    table[:, 1::2] = np.cos(angle[:, 1::2])
    return jnp.asarray(table[None, :, :], dtype=jnp.float32)  # (1, n_pos, d)


if __name__ == "__main__":
    n_trg_vocab = 50
    d_word_vec = d_model = 32
    n_layers = 2
    n_head = 2
    d_k = d_v = 16
    d_inner = 64
    pad_idx = 0
    n_position = 200
    B, L_trg, L_src = 2, 8, 16

    key = jax.random.PRNGKey(0)

    def nxt():
        global key
        key, sub = jax.random.split(key)
        return sub

    # Embedding table with padding_idx row zeroed.
    emb_tbl = jax.random.normal(nxt(), (n_trg_vocab, d_word_vec), jnp.float32) * 0.1
    emb_tbl = emb_tbl.at[pad_idx].set(0.0)

    def mha_params():
        return dict(
            wq=jax.random.normal(nxt(), (d_model, n_head * d_k), jnp.float32) * 0.1,
            wk=jax.random.normal(nxt(), (d_model, n_head * d_k), jnp.float32) * 0.1,
            wv=jax.random.normal(nxt(), (d_model, n_head * d_v), jnp.float32) * 0.1,
            wo=jax.random.normal(nxt(), (n_head * d_v, d_model), jnp.float32) * 0.1,
            g=jnp.ones((1, d_model), jnp.float32),
            b=jnp.zeros((1, d_model), jnp.float32),
        )

    def ffn_params():
        return dict(
            w1=jax.random.normal(nxt(), (d_model, d_inner), jnp.float32) * 0.1,
            b1=jax.random.normal(nxt(), (1, d_inner), jnp.float32) * 0.1,
            w2=jax.random.normal(nxt(), (d_inner, d_model), jnp.float32) * 0.1,
            b2=jax.random.normal(nxt(), (1, d_model), jnp.float32) * 0.1,
            g=jnp.ones((1, d_model), jnp.float32),
            b=jnp.zeros((1, d_model), jnp.float32),
        )

    params = dict(
        emb=emb_tbl,
        pos=sinusoid_table(n_position, d_word_vec),
        ln_g=jnp.ones((1, d_model), jnp.float32),
        ln_b=jnp.zeros((1, d_model), jnp.float32),
        layers=[dict(slf=mha_params(), enc=mha_params(), ffn=ffn_params())
                for _ in range(n_layers)],
    )

    # One-time conversion to the fused-kernel weight layout.
    packed = pack_decoder_params(params, n_head, d_k, d_v)

    # Inputs.
    trg_seq = jax.random.randint(nxt(), (B, L_trg), 1, n_trg_vocab)
    trg_seq = trg_seq.at[1, -2:].set(pad_idx)  # a few pad tokens
    enc_output = jax.random.normal(nxt(), (B, L_src, d_model), jnp.float32)

    # trg_mask = pad mask & subsequent (causal) mask, broadcast to (B, Lq, Lk).
    pad_mask = (trg_seq != pad_idx).astype(jnp.float32)[:, None, :]      # (B,1,L)
    causal = jnp.tril(jnp.ones((L_trg, L_trg), jnp.float32))[None]        # (1,L,L)
    trg_mask = pad_mask * causal                                          # (B,L,L)
    # src_mask (B,1,L_src) broadcast over query positions -> (B, L_trg, L_src).
    src_valid = jnp.ones((B, 1, L_src), jnp.float32).at[1, 0, -4:].set(0.0)
    src_mask = jnp.broadcast_to(src_valid, (B, L_trg, L_src))

    out = decoder_forward(trg_seq, trg_mask, enc_output, src_mask, packed,
                          n_head=n_head, d_k=d_k, d_v=d_v, d_model=d_model,
                          scale_emb=False)
    out = jax.block_until_ready(out)

    ref = ref_decoder(trg_seq, trg_mask, enc_output, src_mask, params,
                      n_head, d_k, d_v, d_model)
    assert out.shape == (B, L_trg, d_model)
    # Tolerance: slightly relaxed vs pure-f32 because the kernel uses the EUP
    # approximate reciprocal for the softmax denominator, an additive mask and
    # one-pass LayerNorm statistics.
    np.testing.assert_allclose(np.asarray(out), np.asarray(ref),
                               rtol=3e-3, atol=3e-3)
    print("KERNEL_OK")
</pallas_src>

<mosaic_0001>
module attributes {stable_mosaic.version = 11 : i64} {
  func.func @decoder_kernel(%arg0: memref<16x1xi32, #tpu.memory_space<vmem>>, %arg1: memref<16x32xf32, #tpu.memory_space<vmem>>, %arg2: memref<32x32xf32, #tpu.memory_space<vmem>>, %arg3: memref<16x16xf32, #tpu.memory_space<vmem>>, %arg4: memref<16x32xf32, #tpu.memory_space<vmem>>, %arg5: memref<50x32xf32, #tpu.memory_space<vmem>>, %arg6: memref<1x32xf32, #tpu.memory_space<vmem>>, %arg7: memref<1x32xf32, #tpu.memory_space<vmem>>, %arg8: memref<2x32x96xf32, #tpu.memory_space<vmem>>, %arg9: memref<2x32x32xf32, #tpu.memory_space<vmem>>, %arg10: memref<2x1x32xf32, #tpu.memory_space<vmem>>, %arg11: memref<2x1x32xf32, #tpu.memory_space<vmem>>, %arg12: memref<2x32x32xf32, #tpu.memory_space<vmem>>, %arg13: memref<2x32x64xf32, #tpu.memory_space<vmem>>, %arg14: memref<2x32x32xf32, #tpu.memory_space<vmem>>, %arg15: memref<2x1x32xf32, #tpu.memory_space<vmem>>, %arg16: memref<2x1x32xf32, #tpu.memory_space<vmem>>, %arg17: memref<2x32x64xf32, #tpu.memory_space<vmem>>, %arg18: memref<2x1x64xf32, #tpu.memory_space<vmem>>, %arg19: memref<2x64x32xf32, #tpu.memory_space<vmem>>, %arg20: memref<2x1x32xf32, #tpu.memory_space<vmem>>, %arg21: memref<2x1x32xf32, #tpu.memory_space<vmem>>, %arg22: memref<2x1x32xf32, #tpu.memory_space<vmem>>, %arg23: memref<16x32xf32, #tpu.memory_space<vmem>>) attributes {dimension_semantics = [], scalar_prefetch = 0 : i64, scratch_operands = 0 : i64, tpu.core_type = #tpu.core_type<tc>} {
    %c0 = arith.constant 0 : index
    %c0_0 = arith.constant 0 : index
    %0 = vector.load %arg0[%c0, %c0_0] : memref<16x1xi32, #tpu.memory_space<vmem>>, vector<16x1xi32>
    %1 = tpu.iota {dimensions = array<i32: 1>} : vector<16x50xi32>
    %2 = vector.broadcast %0 : vector<16x1xi32> to vector<16x50xi32>
    %3 = arith.cmpi eq, %1, %2 : vector<16x50xi32>
    %4 = arith.extui %3 : vector<16x50xi1> to vector<16x50xi32>
    %5 = arith.sitofp %4 : vector<16x50xi32> to vector<16x50xf32>
    %c0_1 = arith.constant 0 : index
    %c0_2 = arith.constant 0 : index
    %6 = vector.load %arg5[%c0_1, %c0_2] : memref<50x32xf32, #tpu.memory_space<vmem>>, vector<50x32xf32>
    %cst = arith.constant dense<0.000000e+00> : vector<16x32xf32>
    %7 = tpu.matmul %5, %6, %cst {dimension_numbers = #tpu.dot_dimension_numbers<[1], [0], [0], [1], [0, 0, 1, 1], [], []>} : vector<16x50xf32>, vector<50x32xf32>, vector<16x32xf32> -> vector<16x32xf32>
    %c0_3 = arith.constant 0 : index
    %c0_4 = arith.constant 0 : index
    %8 = vector.load %arg1[%c0_3, %c0_4] : memref<16x32xf32, #tpu.memory_space<vmem>>, vector<16x32xf32>
    %9 = arith.addf %7, %8 : vector<16x32xf32>
    %c0_5 = arith.constant 0 : index
    %c0_6 = arith.constant 0 : index
    %10 = vector.load %arg6[%c0_5, %c0_6] : memref<1x32xf32, #tpu.memory_space<vmem>>, vector<1x32xf32>
    %c0_7 = arith.constant 0 : index
    %c0_8 = arith.constant 0 : index
    %11 = vector.load %arg7[%c0_7, %c0_8] : memref<1x32xf32, #tpu.memory_space<vmem>>, vector<1x32xf32>
    %cst_9 = arith.constant dense<0.000000e+00> : vector<16xf32>
    %12 = vector.multi_reduction <add>, %9, %cst_9 [1] : vector<16x32xf32> to vector<16xf32>
    %13 = vector.shape_cast %12 : vector<16xf32> to vector<16x1xf32>
    %14 = arith.mulf %9, %9 : vector<16x32xf32>
    %cst_10 = arith.constant dense<0.000000e+00> : vector<16xf32>
    %15 = vector.multi_reduction <add>, %14, %cst_10 [1] : vector<16x32xf32> to vector<16xf32>
    %16 = vector.shape_cast %15 : vector<16xf32> to vector<16x1xf32>
    %cst_11 = arith.constant 3.125000e-02 : f32
    %17 = vector.broadcast %cst_11 : f32 to vector<16x1xf32>
    %18 = arith.mulf %13, %17 : vector<16x1xf32>
    %cst_12 = arith.constant 3.125000e-02 : f32
    %19 = vector.broadcast %cst_12 : f32 to vector<16x1xf32>
    %20 = arith.mulf %16, %19 : vector<16x1xf32>
    %21 = arith.mulf %18, %18 : vector<16x1xf32>
    %22 = arith.subf %20, %21 : vector<16x1xf32>
    %23 = vector.broadcast %18 : vector<16x1xf32> to vector<16x32xf32>
    %24 = arith.subf %9, %23 : vector<16x32xf32>
    %cst_13 = arith.constant 9.99999997E-7 : f32
    %25 = vector.broadcast %cst_13 : f32 to vector<16x1xf32>
    %26 = arith.addf %22, %25 : vector<16x1xf32>
    %27 = math.rsqrt %26 : vector<16x1xf32>
    %28 = vector.broadcast %27 : vector<16x1xf32> to vector<16x32xf32>
    %29 = arith.mulf %24, %28 : vector<16x32xf32>
    %30 = vector.broadcast %10 : vector<1x32xf32> to vector<16x32xf32>
    %31 = arith.mulf %29, %30 : vector<16x32xf32>
    %32 = vector.broadcast %11 : vector<1x32xf32> to vector<16x32xf32>
    %33 = arith.addf %31, %32 : vector<16x32xf32>
    %c0_14 = arith.constant 0 : index
    %c0_15 = arith.constant 0 : index
    %34 = vector.load %arg2[%c0_14, %c0_15] : memref<32x32xf32, #tpu.memory_space<vmem>>, vector<32x32xf32>
    %c0_16 = arith.constant 0 : index
    %c0_17 = arith.constant 0 : index
    %35 = vector.load %arg3[%c0_16, %c0_17] : memref<16x16xf32, #tpu.memory_space<vmem>>, vector<16x16xf32>
    %c0_18 = arith.constant 0 : index
    %c0_19 = arith.constant 0 : index
    %36 = vector.load %arg4[%c0_18, %c0_19] : memref<16x32xf32, #tpu.memory_space<vmem>>, vector<16x32xf32>
    %c0_20 = arith.constant 0 : index
    %c0_21 = arith.constant 0 : index
    %c0_22 = arith.constant 0 : index
    %37 = vector.load %arg8[%c0_20, %c0_21, %c0_22] : memref<2x32x96xf32, #tpu.memory_space<vmem>>, vector<1x32x96xf32>
    %38 = vector.shape_cast %37 : vector<1x32x96xf32> to vector<32x96xf32>
    %c0_23 = arith.constant 0 : index
    %c0_24 = arith.constant 0 : index
    %c0_25 = arith.constant 0 : index
    %39 = vector.load %arg9[%c0_23, %c0_24, %c0_25] : memref<2x32x32xf32, #tpu.memory_space<vmem>>, vector<1x32x32xf32>
    %40 = vector.shape_cast %39 : vector<1x32x32xf32> to vector<32x32xf32>
    %c0_26 = arith.constant 0 : index
    %c0_27 = arith.constant 0 : index
    %c0_28 = arith.constant 0 : index
    %41 = vector.load %arg10[%c0_26, %c0_27, %c0_28] : memref<2x1x32xf32, #tpu.memory_space<vmem>>, vector<1x1x32xf32>
    %42 = vector.shape_cast %41 : vector<1x1x32xf32> to vector<1x32xf32>
    %c0_29 = arith.constant 0 : index
    %c0_30 = arith.constant 0 : index
    %c0_31 = arith.constant 0 : index
    %43 = vector.load %arg11[%c0_29, %c0_30, %c0_31] : memref<2x1x32xf32, #tpu.memory_space<vmem>>, vector<1x1x32xf32>
    %44 = vector.shape_cast %43 : vector<1x1x32xf32> to vector<1x32xf32>
    %cst_32 = arith.constant dense<0.000000e+00> : vector<16x96xf32>
    %45 = tpu.matmul %33, %38, %cst_32 {dimension_numbers = #tpu.dot_dimension_numbers<[1], [0], [0], [1], [0, 0, 1, 1], [], []>} : vector<16x32xf32>, vector<32x96xf32>, vector<16x96xf32> -> vector<16x96xf32>
    %46 = vector.extract_strided_slice %45 {offsets = [0, 0], sizes = [16, 32], strides = [1, 1]} : vector<16x96xf32> to vector<16x32xf32>
    %47 = vector.extract_strided_slice %45 {offsets = [0, 32], sizes = [16, 32], strides = [1, 1]} : vector<16x96xf32> to vector<16x32xf32>
    %48 = vector.extract_strided_slice %45 {offsets = [0, 64], sizes = [16, 32], strides = [1, 1]} : vector<16x96xf32> to vector<16x32xf32>
    %49 = vector.extract_strided_slice %46 {offsets = [0, 0], sizes = [16, 16], strides = [1, 1]} : vector<16x32xf32> to vector<16x16xf32>
    %50 = vector.extract_strided_slice %47 {offsets = [0, 0], sizes = [16, 16], strides = [1, 1]} : vector<16x32xf32> to vector<16x16xf32>
    %51 = vector.extract_strided_slice %48 {offsets = [0, 0], sizes = [16, 16], strides = [1, 1]} : vector<16x32xf32> to vector<16x16xf32>
    %cst_33 = arith.constant dense<0.000000e+00> : vector<16x16xf32>
    %52 = tpu.matmul %49, %50, %cst_33 {dimension_numbers = #tpu.dot_dimension_numbers<[1], [1], [0], [0], [0, 0, 1, 0], [], []>} : vector<16x16xf32>, vector<16x16xf32>, vector<16x16xf32> -> vector<16x16xf32>
    %53 = arith.addf %52, %35 : vector<16x16xf32>
    %cst_34 = arith.constant dense<0xFF800000> : vector<16xf32>
    %54 = vector.multi_reduction <maximumf>, %53, %cst_34 [1] : vector<16x16xf32> to vector<16xf32>
    %55 = vector.shape_cast %54 : vector<16xf32> to vector<16x1xf32>
    %56 = vector.broadcast %55 : vector<16x1xf32> to vector<16x16xf32>
    %57 = arith.subf %53, %56 : vector<16x16xf32>
    %58 = math.exp %57 : vector<16x16xf32>
    %cst_35 = arith.constant dense<0.000000e+00> : vector<16xf32>
    %59 = vector.multi_reduction <add>, %58, %cst_35 [1] : vector<16x16xf32> to vector<16xf32>
    %60 = vector.shape_cast %59 : vector<16xf32> to vector<16x1xf32>
    %61 = tpu.reciprocal %60 {approx = true} : vector<16x1xf32> -> vector<16x1xf32>
    %62 = vector.broadcast %61 : vector<16x1xf32> to vector<16x16xf32>
    %63 = arith.mulf %58, %62 : vector<16x16xf32>
    %cst_36 = arith.constant dense<0.000000e+00> : vector<16x16xf32>
    %64 = tpu.matmul %63, %51, %cst_36 {dimension_numbers = #tpu.dot_dimension_numbers<[1], [0], [0], [1], [0, 0, 1, 1], [], []>} : vector<16x16xf32>, vector<16x16xf32>, vector<16x16xf32> -> vector<16x16xf32>
    %65 = vector.extract_strided_slice %46 {offsets = [0, 16], sizes = [16, 16], strides = [1, 1]} : vector<16x32xf32> to vector<16x16xf32>
    %66 = vector.extract_strided_slice %47 {offsets = [0, 16], sizes = [16, 16], strides = [1, 1]} : vector<16x32xf32> to vector<16x16xf32>
    %67 = vector.extract_strided_slice %48 {offsets = [0, 16], sizes = [16, 16], strides = [1, 1]} : vector<16x32xf32> to vector<16x16xf32>
    %cst_37 = arith.constant dense<0.000000e+00> : vector<16x16xf32>
    %68 = tpu.matmul %65, %66, %cst_37 {dimension_numbers = #tpu.dot_dimension_numbers<[1], [1], [0], [0], [0, 0, 1, 0], [], []>} : vector<16x16xf32>, vector<16x16xf32>, vector<16x16xf32> -> vector<16x16xf32>
    %69 = arith.addf %68, %35 : vector<16x16xf32>
    %cst_38 = arith.constant dense<0xFF800000> : vector<16xf32>
    %70 = vector.multi_reduction <maximumf>, %69, %cst_38 [1] : vector<16x16xf32> to vector<16xf32>
    %71 = vector.shape_cast %70 : vector<16xf32> to vector<16x1xf32>
    %72 = vector.broadcast %71 : vector<16x1xf32> to vector<16x16xf32>
    %73 = arith.subf %69, %72 : vector<16x16xf32>
    %74 = math.exp %73 : vector<16x16xf32>
    %cst_39 = arith.constant dense<0.000000e+00> : vector<16xf32>
    %75 = vector.multi_reduction <add>, %74, %cst_39 [1] : vector<16x16xf32> to vector<16xf32>
    %76 = vector.shape_cast %75 : vector<16xf32> to vector<16x1xf32>
    %77 = tpu.reciprocal %76 {approx = true} : vector<16x1xf32> -> vector<16x1xf32>
    %78 = vector.broadcast %77 : vector<16x1xf32> to vector<16x16xf32>
    %79 = arith.mulf %74, %78 : vector<16x16xf32>
    %cst_40 = arith.constant dense<0.000000e+00> : vector<16x16xf32>
    %80 = tpu.matmul %79, %67, %cst_40 {dimension_numbers = #tpu.dot_dimension_numbers<[1], [0], [0], [1], [0, 0, 1, 1], [], []>} : vector<16x16xf32>, vector<16x16xf32>, vector<16x16xf32> -> vector<16x16xf32>
    %81 = tpu.concatenate %64, %80 in 1 : vector<16x16xf32>, vector<16x16xf32> -> vector<16x32xf32>
    %cst_41 = arith.constant dense<0.000000e+00> : vector<16x32xf32>
    %82 = tpu.matmul %81, %40, %cst_41 {dimension_numbers = #tpu.dot_dimension_numbers<[1], [0], [0], [1], [0, 0, 1, 1], [], []>} : vector<16x32xf32>, vector<32x32xf32>, vector<16x32xf32> -> vector<16x32xf32>
    %83 = arith.addf %82, %33 : vector<16x32xf32>
    %cst_42 = arith.constant dense<0.000000e+00> : vector<16xf32>
    %84 = vector.multi_reduction <add>, %83, %cst_42 [1] : vector<16x32xf32> to vector<16xf32>
    %85 = vector.shape_cast %84 : vector<16xf32> to vector<16x1xf32>
    %86 = arith.mulf %83, %83 : vector<16x32xf32>
    %cst_43 = arith.constant dense<0.000000e+00> : vector<16xf32>
    %87 = vector.multi_reduction <add>, %86, %cst_43 [1] : vector<16x32xf32> to vector<16xf32>
    %88 = vector.shape_cast %87 : vector<16xf32> to vector<16x1xf32>
    %cst_44 = arith.constant 3.125000e-02 : f32
    %89 = vector.broadcast %cst_44 : f32 to vector<16x1xf32>
    %90 = arith.mulf %85, %89 : vector<16x1xf32>
    %cst_45 = arith.constant 3.125000e-02 : f32
    %91 = vector.broadcast %cst_45 : f32 to vector<16x1xf32>
    %92 = arith.mulf %88, %91 : vector<16x1xf32>
    %93 = arith.mulf %90, %90 : vector<16x1xf32>
    %94 = arith.subf %92, %93 : vector<16x1xf32>
    %95 = vector.broadcast %90 : vector<16x1xf32> to vector<16x32xf32>
    %96 = arith.subf %83, %95 : vector<16x32xf32>
    %cst_46 = arith.constant 9.99999997E-7 : f32
    %97 = vector.broadcast %cst_46 : f32 to vector<16x1xf32>
    %98 = arith.addf %94, %97 : vector<16x1xf32>
    %99 = math.rsqrt %98 : vector<16x1xf32>
    %100 = vector.broadcast %99 : vector<16x1xf32> to vector<16x32xf32>
    %101 = arith.mulf %96, %100 : vector<16x32xf32>
    %102 = vector.broadcast %42 : vector<1x32xf32> to vector<16x32xf32>
    %103 = arith.mulf %101, %102 : vector<16x32xf32>
    %104 = vector.broadcast %44 : vector<1x32xf32> to vector<16x32xf32>
    %105 = arith.addf %103, %104 : vector<16x32xf32>
    %c0_47 = arith.constant 0 : index
    %c0_48 = arith.constant 0 : index
    %c0_49 = arith.constant 0 : index
    %106 = vector.load %arg12[%c0_47, %c0_48, %c0_49] : memref<2x32x32xf32, #tpu.memory_space<vmem>>, vector<1x32x32xf32>
    %107 = vector.shape_cast %106 : vector<1x32x32xf32> to vector<32x32xf32>
    %c0_50 = arith.constant 0 : index
    %c0_51 = arith.constant 0 : index
    %c0_52 = arith.constant 0 : index
    %108 = vector.load %arg13[%c0_50, %c0_51, %c0_52] : memref<2x32x64xf32, #tpu.memory_space<vmem>>, vector<1x32x64xf32>
    %109 = vector.shape_cast %108 : vector<1x32x64xf32> to vector<32x64xf32>
    %c0_53 = arith.constant 0 : index
    %c0_54 = arith.constant 0 : index
    %c0_55 = arith.constant 0 : index
    %110 = vector.load %arg14[%c0_53, %c0_54, %c0_55] : memref<2x32x32xf32, #tpu.memory_space<vmem>>, vector<1x32x32xf32>
    %111 = vector.shape_cast %110 : vector<1x32x32xf32> to vector<32x32xf32>
    %c0_56 = arith.constant 0 : index
    %c0_57 = arith.constant 0 : index
    %c0_58 = arith.constant 0 : index
    %112 = vector.load %arg15[%c0_56, %c0_57, %c0_58] : memref<2x1x32xf32, #tpu.memory_space<vmem>>, vector<1x1x32xf32>
    %113 = vector.shape_cast %112 : vector<1x1x32xf32> to vector<1x32xf32>
    %c0_59 = arith.constant 0 : index
    %c0_60 = arith.constant 0 : index
    %c0_61 = arith.constant 0 : index
    %114 = vector.load %arg16[%c0_59, %c0_60, %c0_61] : memref<2x1x32xf32, #tpu.memory_space<vmem>>, vector<1x1x32xf32>
    %115 = vector.shape_cast %114 : vector<1x1x32xf32> to vector<1x32xf32>
    %cst_62 = arith.constant dense<0.000000e+00> : vector<16x32xf32>
    %116 = tpu.matmul %105, %107, %cst_62 {dimension_numbers = #tpu.dot_dimension_numbers<[1], [0], [0], [1], [0, 0, 1, 1], [], []>} : vector<16x32xf32>, vector<32x32xf32>, vector<16x32xf32> -> vector<16x32xf32>
    %cst_63 = arith.constant dense<0.000000e+00> : vector<32x64xf32>
    %117 = tpu.matmul %34, %109, %cst_63 {dimension_numbers = #tpu.dot_dimension_numbers<[1], [0], [0], [1], [0, 0, 1, 1], [], []>} : vector<32x32xf32>, vector<32x64xf32>, vector<32x64xf32> -> vector<32x64xf32>
    %118 = vector.extract_strided_slice %117 {offsets = [0, 0], sizes = [32, 32], strides = [1, 1]} : vector<32x64xf32> to vector<32x32xf32>
    %119 = vector.extract_strided_slice %117 {offsets = [0, 32], sizes = [32, 32], strides = [1, 1]} : vector<32x64xf32> to vector<32x32xf32>
    %120 = vector.extract_strided_slice %116 {offsets = [0, 0], sizes = [16, 16], strides = [1, 1]} : vector<16x32xf32> to vector<16x16xf32>
    %121 = vector.extract_strided_slice %118 {offsets = [0, 0], sizes = [32, 16], strides = [1, 1]} : vector<32x32xf32> to vector<32x16xf32>
    %122 = vector.extract_strided_slice %119 {offsets = [0, 0], sizes = [32, 16], strides = [1, 1]} : vector<32x32xf32> to vector<32x16xf32>
    %cst_64 = arith.constant dense<0.000000e+00> : vector<16x32xf32>
    %123 = tpu.matmul %120, %121, %cst_64 {dimension_numbers = #tpu.dot_dimension_numbers<[1], [1], [0], [0], [0, 0, 1, 0], [], []>} : vector<16x16xf32>, vector<32x16xf32>, vector<16x32xf32> -> vector<16x32xf32>
    %124 = arith.addf %123, %36 : vector<16x32xf32>
    %cst_65 = arith.constant dense<0xFF800000> : vector<16xf32>
    %125 = vector.multi_reduction <maximumf>, %124, %cst_65 [1] : vector<16x32xf32> to vector<16xf32>
    %126 = vector.shape_cast %125 : vector<16xf32> to vector<16x1xf32>
    %127 = vector.broadcast %126 : vector<16x1xf32> to vector<16x32xf32>
    %128 = arith.subf %124, %127 : vector<16x32xf32>
    %129 = math.exp %128 : vector<16x32xf32>
    %cst_66 = arith.constant dense<0.000000e+00> : vector<16xf32>
    %130 = vector.multi_reduction <add>, %129, %cst_66 [1] : vector<16x32xf32> to vector<16xf32>
    %131 = vector.shape_cast %130 : vector<16xf32> to vector<16x1xf32>
    %132 = tpu.reciprocal %131 {approx = true} : vector<16x1xf32> -> vector<16x1xf32>
    %133 = vector.broadcast %132 : vector<16x1xf32> to vector<16x32xf32>
    %134 = arith.mulf %129, %133 : vector<16x32xf32>
    %cst_67 = arith.constant dense<0.000000e+00> : vector<16x16xf32>
    %135 = tpu.matmul %134, %122, %cst_67 {dimension_numbers = #tpu.dot_dimension_numbers<[1], [0], [0], [1], [0, 0, 1, 1], [], []>} : vector<16x32xf32>, vector<32x16xf32>, vector<16x16xf32> -> vector<16x16xf32>
    %136 = vector.extract_strided_slice %116 {offsets = [0, 16], sizes = [16, 16], strides = [1, 1]} : vector<16x32xf32> to vector<16x16xf32>
    %137 = vector.extract_strided_slice %118 {offsets = [0, 16], sizes = [32, 16], strides = [1, 1]} : vector<32x32xf32> to vector<32x16xf32>
    %138 = vector.extract_strided_slice %119 {offsets = [0, 16], sizes = [32, 16], strides = [1, 1]} : vector<32x32xf32> to vector<32x16xf32>
    %cst_68 = arith.constant dense<0.000000e+00> : vector<16x32xf32>
    %139 = tpu.matmul %136, %137, %cst_68 {dimension_numbers = #tpu.dot_dimension_numbers<[1], [1], [0], [0], [0, 0, 1, 0], [], []>} : vector<16x16xf32>, vector<32x16xf32>, vector<16x32xf32> -> vector<16x32xf32>
    %140 = arith.addf %139, %36 : vector<16x32xf32>
    %cst_69 = arith.constant dense<0xFF800000> : vector<16xf32>
    %141 = vector.multi_reduction <maximumf>, %140, %cst_69 [1] : vector<16x32xf32> to vector<16xf32>
    %142 = vector.shape_cast %141 : vector<16xf32> to vector<16x1xf32>
    %143 = vector.broadcast %142 : vector<16x1xf32> to vector<16x32xf32>
    %144 = arith.subf %140, %143 : vector<16x32xf32>
    %145 = math.exp %144 : vector<16x32xf32>
    %cst_70 = arith.constant dense<0.000000e+00> : vector<16xf32>
    %146 = vector.multi_reduction <add>, %145, %cst_70 [1] : vector<16x32xf32> to vector<16xf32>
    %147 = vector.shape_cast %146 : vector<16xf32> to vector<16x1xf32>
    %148 = tpu.reciprocal %147 {approx = true} : vector<16x1xf32> -> vector<16x1xf32>
    %149 = vector.broadcast %148 : vector<16x1xf32> to vector<16x32xf32>
    %150 = arith.mulf %145, %149 : vector<16x32xf32>
    %cst_71 = arith.constant dense<0.000000e+00> : vector<16x16xf32>
    %151 = tpu.matmul %150, %138, %cst_71 {dimension_numbers = #tpu.dot_dimension_numbers<[1], [0], [0], [1], [0, 0, 1, 1], [], []>} : vector<16x32xf32>, vector<32x16xf32>, vector<16x16xf32> -> vector<16x16xf32>
    %152 = tpu.concatenate %135, %151 in 1 : vector<16x16xf32>, vector<16x16xf32> -> vector<16x32xf32>
    %cst_72 = arith.constant dense<0.000000e+00> : vector<16x32xf32>
    %153 = tpu.matmul %152, %111, %cst_72 {dimension_numbers = #tpu.dot_dimension_numbers<[1], [0], [0], [1], [0, 0, 1, 1], [], []>} : vector<16x32xf32>, vector<32x32xf32>, vector<16x32xf32> -> vector<16x32xf32>
    %154 = arith.addf %153, %105 : vector<16x32xf32>
    %cst_73 = arith.constant dense<0.000000e+00> : vector<16xf32>
    %155 = vector.multi_reduction <add>, %154, %cst_73 [1] : vector<16x32xf32> to vector<16xf32>
    %156 = vector.shape_cast %155 : vector<16xf32> to vector<16x1xf32>
    %157 = arith.mulf %154, %154 : vector<16x32xf32>
    %cst_74 = arith.constant dense<0.000000e+00> : vector<16xf32>
    %158 = vector.multi_reduction <add>, %157, %cst_74 [1] : vector<16x32xf32> to vector<16xf32>
    %159 = vector.shape_cast %158 : vector<16xf32> to vector<16x1xf32>
    %cst_75 = arith.constant 3.125000e-02 : f32
    %160 = vector.broadcast %cst_75 : f32 to vector<16x1xf32>
    %161 = arith.mulf %156, %160 : vector<16x1xf32>
    %cst_76 = arith.constant 3.125000e-02 : f32
    %162 = vector.broadcast %cst_76 : f32 to vector<16x1xf32>
    %163 = arith.mulf %159, %162 : vector<16x1xf32>
    %164 = arith.mulf %161, %161 : vector<16x1xf32>
    %165 = arith.subf %163, %164 : vector<16x1xf32>
    %166 = vector.broadcast %161 : vector<16x1xf32> to vector<16x32xf32>
    %167 = arith.subf %154, %166 : vector<16x32xf32>
    %cst_77 = arith.constant 9.99999997E-7 : f32
    %168 = vector.broadcast %cst_77 : f32 to vector<16x1xf32>
    %169 = arith.addf %165, %168 : vector<16x1xf32>
    %170 = math.rsqrt %169 : vector<16x1xf32>
    %171 = vector.broadcast %170 : vector<16x1xf32> to vector<16x32xf32>
    %172 = arith.mulf %167, %171 : vector<16x32xf32>
    %173 = vector.broadcast %113 : vector<1x32xf32> to vector<16x32xf32>
    %174 = arith.mulf %172, %173 : vector<16x32xf32>
    %175 = vector.broadcast %115 : vector<1x32xf32> to vector<16x32xf32>
    %176 = arith.addf %174, %175 : vector<16x32xf32>
    %c0_78 = arith.constant 0 : index
    %c0_79 = arith.constant 0 : index
    %c0_80 = arith.constant 0 : index
    %177 = vector.load %arg17[%c0_78, %c0_79, %c0_80] : memref<2x32x64xf32, #tpu.memory_space<vmem>>, vector<1x32x64xf32>
    %178 = vector.shape_cast %177 : vector<1x32x64xf32> to vector<32x64xf32>
    %c0_81 = arith.constant 0 : index
    %c0_82 = arith.constant 0 : index
    %c0_83 = arith.constant 0 : index
    %179 = vector.load %arg18[%c0_81, %c0_82, %c0_83] : memref<2x1x64xf32, #tpu.memory_space<vmem>>, vector<1x1x64xf32>
    %180 = vector.shape_cast %179 : vector<1x1x64xf32> to vector<1x64xf32>
    %c0_84 = arith.constant 0 : index
    %c0_85 = arith.constant 0 : index
    %c0_86 = arith.constant 0 : index
    %181 = vector.load %arg19[%c0_84, %c0_85, %c0_86] : memref<2x64x32xf32, #tpu.memory_space<vmem>>, vector<1x64x32xf32>
    %182 = vector.shape_cast %181 : vector<1x64x32xf32> to vector<64x32xf32>
    %c0_87 = arith.constant 0 : index
    %c0_88 = arith.constant 0 : index
    %c0_89 = arith.constant 0 : index
    %183 = vector.load %arg20[%c0_87, %c0_88, %c0_89] : memref<2x1x32xf32, #tpu.memory_space<vmem>>, vector<1x1x32xf32>
    %184 = vector.shape_cast %183 : vector<1x1x32xf32> to vector<1x32xf32>
    %c0_90 = arith.constant 0 : index
    %c0_91 = arith.constant 0 : index
    %c0_92 = arith.constant 0 : index
    %185 = vector.load %arg21[%c0_90, %c0_91, %c0_92] : memref<2x1x32xf32, #tpu.memory_space<vmem>>, vector<1x1x32xf32>
    %186 = vector.shape_cast %185 : vector<1x1x32xf32> to vector<1x32xf32>
    %c0_93 = arith.constant 0 : index
    %c0_94 = arith.constant 0 : index
    %c0_95 = arith.constant 0 : index
    %187 = vector.load %arg22[%c0_93, %c0_94, %c0_95] : memref<2x1x32xf32, #tpu.memory_space<vmem>>, vector<1x1x32xf32>
    %188 = vector.shape_cast %187 : vector<1x1x32xf32> to vector<1x32xf32>
    %cst_96 = arith.constant dense<0.000000e+00> : vector<16x64xf32>
    %189 = tpu.matmul %176, %178, %cst_96 {dimension_numbers = #tpu.dot_dimension_numbers<[1], [0], [0], [1], [0, 0, 1, 1], [], []>} : vector<16x32xf32>, vector<32x64xf32>, vector<16x64xf32> -> vector<16x64xf32>
    %190 = vector.broadcast %180 : vector<1x64xf32> to vector<16x64xf32>
    %191 = arith.addf %189, %190 : vector<16x64xf32>
    %cst_97 = arith.constant 0.000000e+00 : f32
    %192 = vector.broadcast %cst_97 : f32 to vector<16x64xf32>
    %193 = arith.maximumf %191, %192 : vector<16x64xf32>
    %cst_98 = arith.constant dense<0.000000e+00> : vector<16x32xf32>
    %194 = tpu.matmul %193, %182, %cst_98 {dimension_numbers = #tpu.dot_dimension_numbers<[1], [0], [0], [1], [0, 0, 1, 1], [], []>} : vector<16x64xf32>, vector<64x32xf32>, vector<16x32xf32> -> vector<16x32xf32>
    %195 = vector.broadcast %184 : vector<1x32xf32> to vector<16x32xf32>
    %196 = arith.addf %194, %195 : vector<16x32xf32>
    %197 = arith.addf %196, %176 : vector<16x32xf32>
    %cst_99 = arith.constant dense<0.000000e+00> : vector<16xf32>
    %198 = vector.multi_reduction <add>, %197, %cst_99 [1] : vector<16x32xf32> to vector<16xf32>
    %199 = vector.shape_cast %198 : vector<16xf32> to vector<16x1xf32>
    %200 = arith.mulf %197, %197 : vector<16x32xf32>
    %cst_100 = arith.constant dense<0.000000e+00> : vector<16xf32>
    %201 = vector.multi_reduction <add>, %200, %cst_100 [1] : vector<16x32xf32> to vector<16xf32>
    %202 = vector.shape_cast %201 : vector<16xf32> to vector<16x1xf32>
    %cst_101 = arith.constant 3.125000e-02 : f32
    %203 = vector.broadcast %cst_101 : f32 to vector<16x1xf32>
    %204 = arith.mulf %199, %203 : vector<16x1xf32>
    %cst_102 = arith.constant 3.125000e-02 : f32
    %205 = vector.broadcast %cst_102 : f32 to vector<16x1xf32>
    %206 = arith.mulf %202, %205 : vector<16x1xf32>
    %207 = arith.mulf %204, %204 : vector<16x1xf32>
    %208 = arith.subf %206, %207 : vector<16x1xf32>
    %209 = vector.broadcast %204 : vector<16x1xf32> to vector<16x32xf32>
    %210 = arith.subf %197, %209 : vector<16x32xf32>
    %cst_103 = arith.constant 9.99999997E-7 : f32
    %211 = vector.broadcast %cst_103 : f32 to vector<16x1xf32>
    %212 = arith.addf %208, %211 : vector<16x1xf32>
    %213 = math.rsqrt %212 : vector<16x1xf32>
    %214 = vector.broadcast %213 : vector<16x1xf32> to vector<16x32xf32>
    %215 = arith.mulf %210, %214 : vector<16x32xf32>
    %216 = vector.broadcast %186 : vector<1x32xf32> to vector<16x32xf32>
    %217 = arith.mulf %215, %216 : vector<16x32xf32>
    %218 = vector.broadcast %188 : vector<1x32xf32> to vector<16x32xf32>
    %219 = arith.addf %217, %218 : vector<16x32xf32>
    %c1 = arith.constant 1 : index
    %c0_104 = arith.constant 0 : index
    %c0_105 = arith.constant 0 : index
    %220 = vector.load %arg8[%c1, %c0_104, %c0_105] : memref<2x32x96xf32, #tpu.memory_space<vmem>>, vector<1x32x96xf32>
    %221 = vector.shape_cast %220 : vector<1x32x96xf32> to vector<32x96xf32>
    %c1_106 = arith.constant 1 : index
    %c0_107 = arith.constant 0 : index
    %c0_108 = arith.constant 0 : index
    %222 = vector.load %arg9[%c1_106, %c0_107, %c0_108] : memref<2x32x32xf32, #tpu.memory_space<vmem>>, vector<1x32x32xf32>
    %223 = vector.shape_cast %222 : vector<1x32x32xf32> to vector<32x32xf32>
    %c1_109 = arith.constant 1 : index
    %c0_110 = arith.constant 0 : index
    %c0_111 = arith.constant 0 : index
    %224 = vector.load %arg10[%c1_109, %c0_110, %c0_111] : memref<2x1x32xf32, #tpu.memory_space<vmem>>, vector<1x1x32xf32>
    %225 = vector.shape_cast %224 : vector<1x1x32xf32> to vector<1x32xf32>
    %c1_112 = arith.constant 1 : index
    %c0_113 = arith.constant 0 : index
    %c0_114 = arith.constant 0 : index
    %226 = vector.load %arg11[%c1_112, %c0_113, %c0_114] : memref<2x1x32xf32, #tpu.memory_space<vmem>>, vector<1x1x32xf32>
    %227 = vector.shape_cast %226 : vector<1x1x32xf32> to vector<1x32xf32>
    %cst_115 = arith.constant dense<0.000000e+00> : vector<16x96xf32>
    %228 = tpu.matmul %219, %221, %cst_115 {dimension_numbers = #tpu.dot_dimension_numbers<[1], [0], [0], [1], [0, 0, 1, 1], [], []>} : vector<16x32xf32>, vector<32x96xf32>, vector<16x96xf32> -> vector<16x96xf32>
    %229 = vector.extract_strided_slice %228 {offsets = [0, 0], sizes = [16, 32], strides = [1, 1]} : vector<16x96xf32> to vector<16x32xf32>
    %230 = vector.extract_strided_slice %228 {offsets = [0, 32], sizes = [16, 32], strides = [1, 1]} : vector<16x96xf32> to vector<16x32xf32>
    %231 = vector.extract_strided_slice %228 {offsets = [0, 64], sizes = [16, 32], strides = [1, 1]} : vector<16x96xf32> to vector<16x32xf32>
    %232 = vector.extract_strided_slice %229 {offsets = [0, 0], sizes = [16, 16], strides = [1, 1]} : vector<16x32xf32> to vector<16x16xf32>
    %233 = vector.extract_strided_slice %230 {offsets = [0, 0], sizes = [16, 16], strides = [1, 1]} : vector<16x32xf32> to vector<16x16xf32>
    %234 = vector.extract_strided_slice %231 {offsets = [0, 0], sizes = [16, 16], strides = [1, 1]} : vector<16x32xf32> to vector<16x16xf32>
    %cst_116 = arith.constant dense<0.000000e+00> : vector<16x16xf32>
    %235 = tpu.matmul %232, %233, %cst_116 {dimension_numbers = #tpu.dot_dimension_numbers<[1], [1], [0], [0], [0, 0, 1, 0], [], []>} : vector<16x16xf32>, vector<16x16xf32>, vector<16x16xf32> -> vector<16x16xf32>
    %236 = arith.addf %235, %35 : vector<16x16xf32>
    %cst_117 = arith.constant dense<0xFF800000> : vector<16xf32>
    %237 = vector.multi_reduction <maximumf>, %236, %cst_117 [1] : vector<16x16xf32> to vector<16xf32>
    %238 = vector.shape_cast %237 : vector<16xf32> to vector<16x1xf32>
    %239 = vector.broadcast %238 : vector<16x1xf32> to vector<16x16xf32>
    %240 = arith.subf %236, %239 : vector<16x16xf32>
    %241 = math.exp %240 : vector<16x16xf32>
    %cst_118 = arith.constant dense<0.000000e+00> : vector<16xf32>
    %242 = vector.multi_reduction <add>, %241, %cst_118 [1] : vector<16x16xf32> to vector<16xf32>
    %243 = vector.shape_cast %242 : vector<16xf32> to vector<16x1xf32>
    %244 = tpu.reciprocal %243 {approx = true} : vector<16x1xf32> -> vector<16x1xf32>
    %245 = vector.broadcast %244 : vector<16x1xf32> to vector<16x16xf32>
    %246 = arith.mulf %241, %245 : vector<16x16xf32>
    %cst_119 = arith.constant dense<0.000000e+00> : vector<16x16xf32>
    %247 = tpu.matmul %246, %234, %cst_119 {dimension_numbers = #tpu.dot_dimension_numbers<[1], [0], [0], [1], [0, 0, 1, 1], [], []>} : vector<16x16xf32>, vector<16x16xf32>, vector<16x16xf32> -> vector<16x16xf32>
    %248 = vector.extract_strided_slice %229 {offsets = [0, 16], sizes = [16, 16], strides = [1, 1]} : vector<16x32xf32> to vector<16x16xf32>
    %249 = vector.extract_strided_slice %230 {offsets = [0, 16], sizes = [16, 16], strides = [1, 1]} : vector<16x32xf32> to vector<16x16xf32>
    %250 = vector.extract_strided_slice %231 {offsets = [0, 16], sizes = [16, 16], strides = [1, 1]} : vector<16x32xf32> to vector<16x16xf32>
    %cst_120 = arith.constant dense<0.000000e+00> : vector<16x16xf32>
    %251 = tpu.matmul %248, %249, %cst_120 {dimension_numbers = #tpu.dot_dimension_numbers<[1], [1], [0], [0], [0, 0, 1, 0], [], []>} : vector<16x16xf32>, vector<16x16xf32>, vector<16x16xf32> -> vector<16x16xf32>
    %252 = arith.addf %251, %35 : vector<16x16xf32>
    %cst_121 = arith.constant dense<0xFF800000> : vector<16xf32>
    %253 = vector.multi_reduction <maximumf>, %252, %cst_121 [1] : vector<16x16xf32> to vector<16xf32>
    %254 = vector.shape_cast %253 : vector<16xf32> to vector<16x1xf32>
    %255 = vector.broadcast %254 : vector<16x1xf32> to vector<16x16xf32>
    %256 = arith.subf %252, %255 : vector<16x16xf32>
    %257 = math.exp %256 : vector<16x16xf32>
    %cst_122 = arith.constant dense<0.000000e+00> : vector<16xf32>
    %258 = vector.multi_reduction <add>, %257, %cst_122 [1] : vector<16x16xf32> to vector<16xf32>
    %259 = vector.shape_cast %258 : vector<16xf32> to vector<16x1xf32>
    %260 = tpu.reciprocal %259 {approx = true} : vector<16x1xf32> -> vector<16x1xf32>
    %261 = vector.broadcast %260 : vector<16x1xf32> to vector<16x16xf32>
    %262 = arith.mulf %257, %261 : vector<16x16xf32>
    %cst_123 = arith.constant dense<0.000000e+00> : vector<16x16xf32>
    %263 = tpu.matmul %262, %250, %cst_123 {dimension_numbers = #tpu.dot_dimension_numbers<[1], [0], [0], [1], [0, 0, 1, 1], [], []>} : vector<16x16xf32>, vector<16x16xf32>, vector<16x16xf32> -> vector<16x16xf32>
    %264 = tpu.concatenate %247, %263 in 1 : vector<16x16xf32>, vector<16x16xf32> -> vector<16x32xf32>
    %cst_124 = arith.constant dense<0.000000e+00> : vector<16x32xf32>
    %265 = tpu.matmul %264, %223, %cst_124 {dimension_numbers = #tpu.dot_dimension_numbers<[1], [0], [0], [1], [0, 0, 1, 1], [], []>} : vector<16x32xf32>, vector<32x32xf32>, vector<16x32xf32> -> vector<16x32xf32>
    %266 = arith.addf %265, %219 : vector<16x32xf32>
    %cst_125 = arith.constant dense<0.000000e+00> : vector<16xf32>
    %267 = vector.multi_reduction <add>, %266, %cst_125 [1] : vector<16x32xf32> to vector<16xf32>
    %268 = vector.shape_cast %267 : vector<16xf32> to vector<16x1xf32>
    %269 = arith.mulf %266, %266 : vector<16x32xf32>
    %cst_126 = arith.constant dense<0.000000e+00> : vector<16xf32>
    %270 = vector.multi_reduction <add>, %269, %cst_126 [1] : vector<16x32xf32> to vector<16xf32>
    %271 = vector.shape_cast %270 : vector<16xf32> to vector<16x1xf32>
    %cst_127 = arith.constant 3.125000e-02 : f32
    %272 = vector.broadcast %cst_127 : f32 to vector<16x1xf32>
    %273 = arith.mulf %268, %272 : vector<16x1xf32>
    %cst_128 = arith.constant 3.125000e-02 : f32
    %274 = vector.broadcast %cst_128 : f32 to vector<16x1xf32>
    %275 = arith.mulf %271, %274 : vector<16x1xf32>
    %276 = arith.mulf %273, %273 : vector<16x1xf32>
    %277 = arith.subf %275, %276 : vector<16x1xf32>
    %278 = vector.broadcast %273 : vector<16x1xf32> to vector<16x32xf32>
    %279 = arith.subf %266, %278 : vector<16x32xf32>
    %cst_129 = arith.constant 9.99999997E-7 : f32
    %280 = vector.broadcast %cst_129 : f32 to vector<16x1xf32>
    %281 = arith.addf %277, %280 : vector<16x1xf32>
    %282 = math.rsqrt %281 : vector<16x1xf32>
    %283 = vector.broadcast %282 : vector<16x1xf32> to vector<16x32xf32>
    %284 = arith.mulf %279, %283 : vector<16x32xf32>
    %285 = vector.broadcast %225 : vector<1x32xf32> to vector<16x32xf32>
    %286 = arith.mulf %284, %285 : vector<16x32xf32>
    %287 = vector.broadcast %227 : vector<1x32xf32> to vector<16x32xf32>
    %288 = arith.addf %286, %287 : vector<16x32xf32>
    %c1_130 = arith.constant 1 : index
    %c0_131 = arith.constant 0 : index
    %c0_132 = arith.constant 0 : index
    %289 = vector.load %arg12[%c1_130, %c0_131, %c0_132] : memref<2x32x32xf32, #tpu.memory_space<vmem>>, vector<1x32x32xf32>
    %290 = vector.shape_cast %289 : vector<1x32x32xf32> to vector<32x32xf32>
    %c1_133 = arith.constant 1 : index
    %c0_134 = arith.constant 0 : index
    %c0_135 = arith.constant 0 : index
    %291 = vector.load %arg13[%c1_133, %c0_134, %c0_135] : memref<2x32x64xf32, #tpu.memory_space<vmem>>, vector<1x32x64xf32>
    %292 = vector.shape_cast %291 : vector<1x32x64xf32> to vector<32x64xf32>
    %c1_136 = arith.constant 1 : index
    %c0_137 = arith.constant 0 : index
    %c0_138 = arith.constant 0 : index
    %293 = vector.load %arg14[%c1_136, %c0_137, %c0_138] : memref<2x32x32xf32, #tpu.memory_space<vmem>>, vector<1x32x32xf32>
    %294 = vector.shape_cast %293 : vector<1x32x32xf32> to vector<32x32xf32>
    %c1_139 = arith.constant 1 : index
    %c0_140 = arith.constant 0 : index
    %c0_141 = arith.constant 0 : index
    %295 = vector.load %arg15[%c1_139, %c0_140, %c0_141] : memref<2x1x32xf32, #tpu.memory_space<vmem>>, vector<1x1x32xf32>
    %296 = vector.shape_cast %295 : vector<1x1x32xf32> to vector<1x32xf32>
    %c1_142 = arith.constant 1 : index
    %c0_143 = arith.constant 0 : index
    %c0_144 = arith.constant 0 : index
    %297 = vector.load %arg16[%c1_142, %c0_143, %c0_144] : memref<2x1x32xf32, #tpu.memory_space<vmem>>, vector<1x1x32xf32>
    %298 = vector.shape_cast %297 : vector<1x1x32xf32> to vector<1x32xf32>
    %cst_145 = arith.constant dense<0.000000e+00> : vector<16x32xf32>
    %299 = tpu.matmul %288, %290, %cst_145 {dimension_numbers = #tpu.dot_dimension_numbers<[1], [0], [0], [1], [0, 0, 1, 1], [], []>} : vector<16x32xf32>, vector<32x32xf32>, vector<16x32xf32> -> vector<16x32xf32>
    %cst_146 = arith.constant dense<0.000000e+00> : vector<32x64xf32>
    %300 = tpu.matmul %34, %292, %cst_146 {dimension_numbers = #tpu.dot_dimension_numbers<[1], [0], [0], [1], [0, 0, 1, 1], [], []>} : vector<32x32xf32>, vector<32x64xf32>, vector<32x64xf32> -> vector<32x64xf32>
    %301 = vector.extract_strided_slice %300 {offsets = [0, 0], sizes = [32, 32], strides = [1, 1]} : vector<32x64xf32> to vector<32x32xf32>
    %302 = vector.extract_strided_slice %300 {offsets = [0, 32], sizes = [32, 32], strides = [1, 1]} : vector<32x64xf32> to vector<32x32xf32>
    %303 = vector.extract_strided_slice %299 {offsets = [0, 0], sizes = [16, 16], strides = [1, 1]} : vector<16x32xf32> to vector<16x16xf32>
    %304 = vector.extract_strided_slice %301 {offsets = [0, 0], sizes = [32, 16], strides = [1, 1]} : vector<32x32xf32> to vector<32x16xf32>
    %305 = vector.extract_strided_slice %302 {offsets = [0, 0], sizes = [32, 16], strides = [1, 1]} : vector<32x32xf32> to vector<32x16xf32>
    %cst_147 = arith.constant dense<0.000000e+00> : vector<16x32xf32>
    %306 = tpu.matmul %303, %304, %cst_147 {dimension_numbers = #tpu.dot_dimension_numbers<[1], [1], [0], [0], [0, 0, 1, 0], [], []>} : vector<16x16xf32>, vector<32x16xf32>, vector<16x32xf32> -> vector<16x32xf32>
    %307 = arith.addf %306, %36 : vector<16x32xf32>
    %cst_148 = arith.constant dense<0xFF800000> : vector<16xf32>
    %308 = vector.multi_reduction <maximumf>, %307, %cst_148 [1] : vector<16x32xf32> to vector<16xf32>
    %309 = vector.shape_cast %308 : vector<16xf32> to vector<16x1xf32>
    %310 = vector.broadcast %309 : vector<16x1xf32> to vector<16x32xf32>
    %311 = arith.subf %307, %310 : vector<16x32xf32>
    %312 = math.exp %311 : vector<16x32xf32>
    %cst_149 = arith.constant dense<0.000000e+00> : vector<16xf32>
    %313 = vector.multi_reduction <add>, %312, %cst_149 [1] : vector<16x32xf32> to vector<16xf32>
    %314 = vector.shape_cast %313 : vector<16xf32> to vector<16x1xf32>
    %315 = tpu.reciprocal %314 {approx = true} : vector<16x1xf32> -> vector<16x1xf32>
    %316 = vector.broadcast %315 : vector<16x1xf32> to vector<16x32xf32>
    %317 = arith.mulf %312, %316 : vector<16x32xf32>
    %cst_150 = arith.constant dense<0.000000e+00> : vector<16x16xf32>
    %318 = tpu.matmul %317, %305, %cst_150 {dimension_numbers = #tpu.dot_dimension_numbers<[1], [0], [0], [1], [0, 0, 1, 1], [], []>} : vector<16x32xf32>, vector<32x16xf32>, vector<16x16xf32> -> vector<16x16xf32>
    %319 = vector.extract_strided_slice %299 {offsets = [0, 16], sizes = [16, 16], strides = [1, 1]} : vector<16x32xf32> to vector<16x16xf32>
    %320 = vector.extract_strided_slice %301 {offsets = [0, 16], sizes = [32, 16], strides = [1, 1]} : vector<32x32xf32> to vector<32x16xf32>
    %321 = vector.extract_strided_slice %302 {offsets = [0, 16], sizes = [32, 16], strides = [1, 1]} : vector<32x32xf32> to vector<32x16xf32>
    %cst_151 = arith.constant dense<0.000000e+00> : vector<16x32xf32>
    %322 = tpu.matmul %319, %320, %cst_151 {dimension_numbers = #tpu.dot_dimension_numbers<[1], [1], [0], [0], [0, 0, 1, 0], [], []>} : vector<16x16xf32>, vector<32x16xf32>, vector<16x32xf32> -> vector<16x32xf32>
    %323 = arith.addf %322, %36 : vector<16x32xf32>
    %cst_152 = arith.constant dense<0xFF800000> : vector<16xf32>
    %324 = vector.multi_reduction <maximumf>, %323, %cst_152 [1] : vector<16x32xf32> to vector<16xf32>
    %325 = vector.shape_cast %324 : vector<16xf32> to vector<16x1xf32>
    %326 = vector.broadcast %325 : vector<16x1xf32> to vector<16x32xf32>
    %327 = arith.subf %323, %326 : vector<16x32xf32>
    %328 = math.exp %327 : vector<16x32xf32>
    %cst_153 = arith.constant dense<0.000000e+00> : vector<16xf32>
    %329 = vector.multi_reduction <add>, %328, %cst_153 [1] : vector<16x32xf32> to vector<16xf32>
    %330 = vector.shape_cast %329 : vector<16xf32> to vector<16x1xf32>
    %331 = tpu.reciprocal %330 {approx = true} : vector<16x1xf32> -> vector<16x1xf32>
    %332 = vector.broadcast %331 : vector<16x1xf32> to vector<16x32xf32>
    %333 = arith.mulf %328, %332 : vector<16x32xf32>
    %cst_154 = arith.constant dense<0.000000e+00> : vector<16x16xf32>
    %334 = tpu.matmul %333, %321, %cst_154 {dimension_numbers = #tpu.dot_dimension_numbers<[1], [0], [0], [1], [0, 0, 1, 1], [], []>} : vector<16x32xf32>, vector<32x16xf32>, vector<16x16xf32> -> vector<16x16xf32>
    %335 = tpu.concatenate %318, %334 in 1 : vector<16x16xf32>, vector<16x16xf32> -> vector<16x32xf32>
    %cst_155 = arith.constant dense<0.000000e+00> : vector<16x32xf32>
    %336 = tpu.matmul %335, %294, %cst_155 {dimension_numbers = #tpu.dot_dimension_numbers<[1], [0], [0], [1], [0, 0, 1, 1], [], []>} : vector<16x32xf32>, vector<32x32xf32>, vector<16x32xf32> -> vector<16x32xf32>
    %337 = arith.addf %336, %288 : vector<16x32xf32>
    %cst_156 = arith.constant dense<0.000000e+00> : vector<16xf32>
    %338 = vector.multi_reduction <add>, %337, %cst_156 [1] : vector<16x32xf32> to vector<16xf32>
    %339 = vector.shape_cast %338 : vector<16xf32> to vector<16x1xf32>
    %340 = arith.mulf %337, %337 : vector<16x32xf32>
    %cst_157 = arith.constant dense<0.000000e+00> : vector<16xf32>
    %341 = vector.multi_reduction <add>, %340, %cst_157 [1] : vector<16x32xf32> to vector<16xf32>
    %342 = vector.shape_cast %341 : vector<16xf32> to vector<16x1xf32>
    %cst_158 = arith.constant 3.125000e-02 : f32
    %343 = vector.broadcast %cst_158 : f32 to vector<16x1xf32>
    %344 = arith.mulf %339, %343 : vector<16x1xf32>
    %cst_159 = arith.constant 3.125000e-02 : f32
    %345 = vector.broadcast %cst_159 : f32 to vector<16x1xf32>
    %346 = arith.mulf %342, %345 : vector<16x1xf32>
    %347 = arith.mulf %344, %344 : vector<16x1xf32>
    %348 = arith.subf %346, %347 : vector<16x1xf32>
    %349 = vector.broadcast %344 : vector<16x1xf32> to vector<16x32xf32>
    %350 = arith.subf %337, %349 : vector<16x32xf32>
    %cst_160 = arith.constant 9.99999997E-7 : f32
    %351 = vector.broadcast %cst_160 : f32 to vector<16x1xf32>
    %352 = arith.addf %348, %351 : vector<16x1xf32>
    %353 = math.rsqrt %352 : vector<16x1xf32>
    %354 = vector.broadcast %353 : vector<16x1xf32> to vector<16x32xf32>
    %355 = arith.mulf %350, %354 : vector<16x32xf32>
    %356 = vector.broadcast %296 : vector<1x32xf32> to vector<16x32xf32>
    %357 = arith.mulf %355, %356 : vector<16x32xf32>
    %358 = vector.broadcast %298 : vector<1x32xf32> to vector<16x32xf32>
    %359 = arith.addf %357, %358 : vector<16x32xf32>
    %c1_161 = arith.constant 1 : index
    %c0_162 = arith.constant 0 : index
    %c0_163 = arith.constant 0 : index
    %360 = vector.load %arg17[%c1_161, %c0_162, %c0_163] : memref<2x32x64xf32, #tpu.memory_space<vmem>>, vector<1x32x64xf32>
    %361 = vector.shape_cast %360 : vector<1x32x64xf32> to vector<32x64xf32>
    %c1_164 = arith.constant 1 : index
    %c0_165 = arith.constant 0 : index
    %c0_166 = arith.constant 0 : index
    %362 = vector.load %arg18[%c1_164, %c0_165, %c0_166] : memref<2x1x64xf32, #tpu.memory_space<vmem>>, vector<1x1x64xf32>
    %363 = vector.shape_cast %362 : vector<1x1x64xf32> to vector<1x64xf32>
    %c1_167 = arith.constant 1 : index
    %c0_168 = arith.constant 0 : index
    %c0_169 = arith.constant 0 : index
    %364 = vector.load %arg19[%c1_167, %c0_168, %c0_169] : memref<2x64x32xf32, #tpu.memory_space<vmem>>, vector<1x64x32xf32>
    %365 = vector.shape_cast %364 : vector<1x64x32xf32> to vector<64x32xf32>
    %c1_170 = arith.constant 1 : index
    %c0_171 = arith.constant 0 : index
    %c0_172 = arith.constant 0 : index
    %366 = vector.load %arg20[%c1_170, %c0_171, %c0_172] : memref<2x1x32xf32, #tpu.memory_space<vmem>>, vector<1x1x32xf32>
    %367 = vector.shape_cast %366 : vector<1x1x32xf32> to vector<1x32xf32>
    %c1_173 = arith.constant 1 : index
    %c0_174 = arith.constant 0 : index
    %c0_175 = arith.constant 0 : index
    %368 = vector.load %arg21[%c1_173, %c0_174, %c0_175] : memref<2x1x32xf32, #tpu.memory_space<vmem>>, vector<1x1x32xf32>
    %369 = vector.shape_cast %368 : vector<1x1x32xf32> to vector<1x32xf32>
    %c1_176 = arith.constant 1 : index
    %c0_177 = arith.constant 0 : index
    %c0_178 = arith.constant 0 : index
    %370 = vector.load %arg22[%c1_176, %c0_177, %c0_178] : memref<2x1x32xf32, #tpu.memory_space<vmem>>, vector<1x1x32xf32>
    %371 = vector.shape_cast %370 : vector<1x1x32xf32> to vector<1x32xf32>
    %cst_179 = arith.constant dense<0.000000e+00> : vector<16x64xf32>
    %372 = tpu.matmul %359, %361, %cst_179 {dimension_numbers = #tpu.dot_dimension_numbers<[1], [0], [0], [1], [0, 0, 1, 1], [], []>} : vector<16x32xf32>, vector<32x64xf32>, vector<16x64xf32> -> vector<16x64xf32>
    %373 = vector.broadcast %363 : vector<1x64xf32> to vector<16x64xf32>
    %374 = arith.addf %372, %373 : vector<16x64xf32>
    %cst_180 = arith.constant 0.000000e+00 : f32
    %375 = vector.broadcast %cst_180 : f32 to vector<16x64xf32>
    %376 = arith.maximumf %374, %375 : vector<16x64xf32>
    %cst_181 = arith.constant dense<0.000000e+00> : vector<16x32xf32>
    %377 = tpu.matmul %376, %365, %cst_181 {dimension_numbers = #tpu.dot_dimension_numbers<[1], [0], [0], [1], [0, 0, 1, 1], [], []>} : vector<16x64xf32>, vector<64x32xf32>, vector<16x32xf32> -> vector<16x32xf32>
    %378 = vector.broadcast %367 : vector<1x32xf32> to vector<16x32xf32>
    %379 = arith.addf %377, %378 : vector<16x32xf32>
    %380 = arith.addf %379, %359 : vector<16x32xf32>
    %cst_182 = arith.constant dense<0.000000e+00> : vector<16xf32>
    %381 = vector.multi_reduction <add>, %380, %cst_182 [1] : vector<16x32xf32> to vector<16xf32>
    %382 = vector.shape_cast %381 : vector<16xf32> to vector<16x1xf32>
    %383 = arith.mulf %380, %380 : vector<16x32xf32>
    %cst_183 = arith.constant dense<0.000000e+00> : vector<16xf32>
    %384 = vector.multi_reduction <add>, %383, %cst_183 [1] : vector<16x32xf32> to vector<16xf32>
    %385 = vector.shape_cast %384 : vector<16xf32> to vector<16x1xf32>
    %cst_184 = arith.constant 3.125000e-02 : f32
    %386 = vector.broadcast %cst_184 : f32 to vector<16x1xf32>
    %387 = arith.mulf %382, %386 : vector<16x1xf32>
    %cst_185 = arith.constant 3.125000e-02 : f32
    %388 = vector.broadcast %cst_185 : f32 to vector<16x1xf32>
    %389 = arith.mulf %385, %388 : vector<16x1xf32>
    %390 = arith.mulf %387, %387 : vector<16x1xf32>
    %391 = arith.subf %389, %390 : vector<16x1xf32>
    %392 = vector.broadcast %387 : vector<16x1xf32> to vector<16x32xf32>
    %393 = arith.subf %380, %392 : vector<16x32xf32>
    %cst_186 = arith.constant 9.99999997E-7 : f32
    %394 = vector.broadcast %cst_186 : f32 to vector<16x1xf32>
    %395 = arith.addf %391, %394 : vector<16x1xf32>
    %396 = math.rsqrt %395 : vector<16x1xf32>
    %397 = vector.broadcast %396 : vector<16x1xf32> to vector<16x32xf32>
    %398 = arith.mulf %393, %397 : vector<16x32xf32>
    %399 = vector.broadcast %369 : vector<1x32xf32> to vector<16x32xf32>
    %400 = arith.mulf %398, %399 : vector<16x32xf32>
    %401 = vector.broadcast %371 : vector<1x32xf32> to vector<16x32xf32>
    %402 = arith.addf %400, %401 : vector<16x32xf32>
    %c0_187 = arith.constant 0 : index
    %c0_188 = arith.constant 0 : index
    %403 = vector.load %arg23[%c0_187, %c0_188] : memref<16x32xf32, #tpu.memory_space<vmem>>, vector<16x32xf32>
    tpu.vector_store %arg23[%c0_187, %c0_188], %402 {strides = array<i32>} : memref<16x32xf32, #tpu.memory_space<vmem>>, vector<16x32xf32>,
    return
  }
}

</mosaic_0001>

<bundles_post_ra>
// kernel: decoder_forward.1
= control target key start
LH: loop header
LB: loop body
LE: loop exit
PB: predicated region body
PF: predicated region fallthrough
CT: control target
= control target key end

     0   :  { %s5146_s0 = inlined_call_operand.vmem [shape: s32[16,1], index: 0, kind: input, shape index: {}]   ;;  %s5147_s1 = inlined_call_operand.vmem [shape: f32[16,32], index: 1, kind: input, shape index: {}]   ;;  %s5148_s2 = inlined_call_operand.vmem [shape: f32[32,32], index: 2, kind: input, shape index: {}]   ;;  %s5149_s3 = inlined_call_operand.vmem [shape: f32[16,16], index: 3, kind: input, shape index: {}]   ;;  %s5150_s4 = inlined_call_operand.vmem [shape: f32[16,32], index: 4, kind: input, shape index: {}]   ;;  %s5151_s5 = inlined_call_operand.vmem [shape: f32[50,32], index: 5, kind: input, shape index: {}]   ;;  %s5152_s6 = inlined_call_operand.vmem [shape: f32[1,32], index: 6, kind: input, shape index: {}]   ;;  %s5153_s7 = inlined_call_operand.vmem [shape: f32[1,32], index: 7, kind: input, shape index: {}]   ;;  %s5154_s8 = inlined_call_operand.vmem [shape: f32[2,32,96], index: 8, kind: input, shape index: {}]   ;;  %s5155_s9 = inlined_call_operand.vmem [shape: f32[2,32,32], index: 9, kind: input, shape index: {}]   ;;  %s5156_s10 = inlined_call_operand.vmem [shape: f32[2,1,32], index: 10, kind: input, shape index: {}]   ;;  %s5157_s11 = inlined_call_operand.vmem [shape: f32[2,1,32], index: 11, kind: input, shape index: {}]   ;;  %s5158_s12 = inlined_call_operand.vmem [shape: f32[2,32,32], index: 12, kind: input, shape index: {}]   ;;  %s5159_s13 = inlined_call_operand.vmem [shape: f32[2,32,64], index: 13, kind: input, shape index: {}]   ;;  %s5160_s14 = inlined_call_operand.vmem [shape: f32[2,32,32], index: 14, kind: input, shape index: {}]   ;;  %s5161_s15 = inlined_call_operand.vmem [shape: f32[2,1,32], index: 15, kind: input, shape index: {}]   ;;  %s5162_s16 = inlined_call_operand.vmem [shape: f32[2,1,32], index: 16, kind: input, shape index: {}]   ;;  %s5163_s17 = inlined_call_operand.vmem [shape: f32[2,32,64], index: 17, kind: input, shape index: {}]   ;;  %s5164_s18 = inlined_call_operand.vmem [shape: f32[2,1,64], index: 18, kind: input, shape index: {}]   ;;  %s5165_s19 = inlined_call_operand.vmem [shape: f32[2,64,32], index: 19, kind: input, shape index: {}]   ;;  %s5166_s20 = inlined_call_operand.vmem [shape: f32[2,1,32], index: 20, kind: input, shape index: {}]   ;;  %s5167_s21 = inlined_call_operand.vmem [shape: f32[2,1,32], index: 21, kind: input, shape index: {}]   ;;  %s5168_s22 = inlined_call_operand.vmem [shape: f32[2,1,32], index: 22, kind: input, shape index: {}]   ;;  %s5169_s23 = inlined_call_operand.hbm [shape: f32[16,32], index: 23, kind: output, shape index: {}]  }
   0x1   :  { %5181 = sst [smem:[#allocation5_spill]] %s5146_s0 }
   0x2   :  { %5182 = sst [smem:[#allocation6_spill]] %s5147_s1 }
   0x3   :  { %5183 = sst [smem:[#allocation7_spill]] %s5148_s2 }
   0x4   :  { %5184 = sst [smem:[#allocation8_spill]] %s5149_s3 }
   0x5   :  { %5185 = sst [smem:[#allocation9_spill]] %s5150_s4 }
   0x6   :  { %5186 = sst [smem:[#allocation10_spill]] %s5151_s5 }
   0x7   :  { %5187 = sst [smem:[#allocation11_spill]] %s5152_s6 }
   0x8   :  { %5188 = sst [smem:[#allocation12_spill]] %s5153_s7 }
   0x9   :  { %5189 = sst [smem:[#allocation13_spill]] %s5164_s18 }
   0xa   :  { %s5190_s24 = sld [smem:[#allocation5_spill]]  ;;  %vm107_vm0 = vcmask 1041408   ;;  %v4306_v2 = vmov 0  }
   0xb   :  { %s5191_s18 = sld [smem:[#allocation10_spill]]  ;;  %4184 = vset.pattern.permute.xlu0 %v4306_v2 }
  0x10   :  { %v75_v0 = vld [vmem:[%s5190_s24] sm:$0xff]  ;;  %v76_v5 = vld [vmem:[%s5190_s24 + $0x8] sm:$0xff] }
  0x11   :  { %v97_v1 = vld [vmem:[%s5191_s18 + $0x30] sm:$0x3]  ;;  %v96_v3 = vld [vmem:[%s5191_s18 + $0x28] sm:$0xff]  ;;  %80 = vperm.xlu0 %4184, %v75_v0   ;;  %v95_v4 = vld [vmem:[%s5191_s18 + $0x20] sm:$0xff] }
  0x12   :  { %3836 = vmatprep.subr.msk.mxu0 %vm107_vm0, %v97_v1 }
  0x13   :  { %3837 = vmatpush3.msk.msra.mxu0 %vm107_vm0, %v97_v1 }
  0x14   :  { %3838 = vmatprep.subr.mxu0 %v96_v3 }
  0x15   :  { %28 = vsyncpa [#allocation3], 0  ;;  %3839 = vmatpush3.msra.mxu0 %v96_v3  ;;  %v94_v6 = vld [vmem:[%s5191_s18 + $0x18] sm:$0xff]  ;;  %83 = vperm.xlu0 %4184, %v76_v5   ;;  %v93_v7 = vld [vmem:[%s5191_s18 + $0x10] sm:$0xff]  ;;  %v77_v10 = vlaneseq  ;;  %vm100_vm1 = vcmask 408576   ;;  %v4307_v13 = vmov 0.0  }
  0x16   :  { %3840 = vmatprep.subr.mxu0 %v95_v4  ;;  %v92_v8 = vld [vmem:[%s5191_s18 + $0x8] sm:$0xff]  ;;  %v91_v9 = vld [vmem:[%s5191_s18] sm:$0xff]  ;;  %s5192_s26 = sld [smem:[#allocation6_spill]]  ;;  %vm188_vm4 = vcmask 261120   ;;  %v246_v29 = vld [vmem:[%s5154_s8 + $0x18] sm:$0xff]  ;;  %vm340_vm5 = vcmask 130048  }
  0x17   :  { %3841 = vmatpush3.msra.mxu0 %v95_v4  ;;  %v78_v11 = vand.u32 127, %v77_v10  ;;  %v245_v30 = vld [vmem:[%s5154_s8 + $0x10] sm:$0xff]  ;;  %3853 = vmatprep.subr.mxu1 %v246_v29  ;;  %v244_v31 = vld [vmem:[%s5154_s8 + $0x8] sm:$0xff]  ;;  %v243_v32 = vld [vmem:[%s5154_s8] sm:$0xff]  ;;  %s5193_s25 = sld [smem:[#allocation11_spill]]  ;;  %s4308_s18 = smov 96  }
  0x18   :  { %3842 = vmatprep.subr.mxu0 %v94_v6  ;;  %3854 = vmatpush3.msra.mxu1 %v246_v29  ;;  %s4309_s2 = smov 112   ;;  %s4310_s6 = smov 80   ;;  %vm1732_vm6 = vcmask 523264  }
  0x19   :  { %3843 = vmatpush3.msra.mxu0 %v94_v6  ;;  %3855 = vmatprep.subr.mxu1 %v245_v30  ;;  %s5195_s28 = sld [smem:[#allocation8_spill]]  ;;  %s4311_s0 = smov 64  }
  0x1a   :  { %3844 = vmatprep.subr.mxu0 %v93_v7  ;;  %3856 = vmatpush3.msra.mxu1 %v245_v30  ;;  %s5177_s4 = smov 48   ;;  %s5179_s29 = smov 16  }
  0x1b   :  { %3845 = vmatpush3.msra.mxu0 %v93_v7  ;;  %3857 = vmatprep.subr.mxu1 %v244_v31  ;;  %s5196_s30 = sld [smem:[#allocation7_spill]]  ;;  %s5200_s1 = smov 16  }
  0x1c   :  { %3846 = vmatprep.subr.mxu0 %v92_v8  ;;  %v99_v17 = vld [vmem:[%s5192_s26 + $0x8] sm:$0xff]  ;;  %v98_v19 = vld [vmem:[%s5192_s26] sm:$0xff]  ;;  %3858 = vmatpush3.msra.mxu1 %v244_v31  ;;  %s5194_s26 = sld [smem:[#allocation12_spill]]  ;;  %s4314_s5 = smov [#allocation2]  }
  0x1d   :  { %3847 = vmatpush3.msra.mxu0 %v92_v8  ;;  %3859 = vmatprep.subr.mxu1 %v243_v32  ;;  %v3505_v49 = vld [vmem:[%s5193_s25] ss:$0 sm:$0xff] }
  0x1e   :  { %3848 = vmatprep.subr.mxu0 %v91_v9  ;;  %3860 = vmatpush3.msra.mxu1 %v243_v32 }
  0x1f   :  { %3849 = vmatpush3.msra.mxu0 %v91_v9  ;;  %v240_v3 = vld [vmem:[%s5195_s28 + $0x8] sm:$0xff]  ;;  %v239_v5 = vld [vmem:[%s5195_s28] sm:$0xff] }
  0x22   :  { %v3506_v53 = vld [vmem:[%s5194_s26] ss:$0 sm:$0xff]  ;;  %s5197_s26 = sld [smem:[#allocation9_spill]] }
  0x8c   :  { %v81_v12 = vpop.permute.xlu0 %80 }
  0x8d   :  { %vm85_vm2 = vcmp.eq.s32.totalorder %v78_v11, %v81_v12 }
  0x8e   :  { %v3500_v14 = vsel %vm85_vm2, 1.0, %v4307_v13 }
  0x8f   :  { %3850 = vmatprep.mubr.msk.f32.mxu0 %vm100_vm1, %v3500_v14 }
  0x90   :  { %v84_v15 = vpop.permute.xlu0 %83 }
  0x91   :  { %vm86_vm3 = vcmp.eq.s32.totalorder %v78_v11, %v84_v15 }
  0x92   :  { %v3501_v16 = vsel %vm86_vm3, 1.0, %v4307_v13 }
  0x93   :  { %3851 = vmatmul.mubr.msk.f32.vlgmr.msra.gmra.mxu0 %vm100_vm1, %v3501_v16 }
 0x153   :  { %v3852_v18 = vpop.f32.mrf.mxu0 }
 0x154   :  { %v183_v20 = vadd.f32 %v3852_v18, %v99_v17 }
 0x155   :  { %v177_v21 = vpop.f32.mrf.mxu0 }
 0x156   :  { %v178_v22 = vadd.f32 %v177_v21, %v98_v19  ;;  %v192_v23 = vsel %vm188_vm4, %v183_v20, 0.0  ;;  %v196_v27 = vmul.f32 %v183_v20, %v183_v20 }
 0x157   :  { %193 = vadd.xlane.f32.xlu1 %v192_v23 }
 0x158   :  { %v195_v24 = vmul.f32 %v178_v22, %v178_v22  ;;  %v189_v26 = vsel %vm188_vm4, %v178_v22, 0.0  ;;  %v200_v28 = vsel %vm188_vm4, %v196_v27, 0.0 }
 0x15a   :  { %v197_v25 = vsel %vm188_vm4, %v195_v24, 0.0 }
 0x15b   :  { %198 = vadd.xlane.f32.xlu0 %v197_v25  ;;  %190 = vadd.xlane.f32.xlu1 %v189_v26 }
 0x15f   :  { %201 = vadd.xlane.f32.xlu1 %v200_v28 }
 0x1e0   :  { %v194_v33 = vpop.xlane.xlu1 %193 }
 0x1e1   :  { %v204_v36 = vmul.f32 0.03125, %v194_v33 }
 0x1e3   :  { %v208_v41 = vmul.f32 %v204_v36, %v204_v36  ;;  %v212_v50 = vsub.f32 %v183_v20, %v204_v36 }
 0x1e4   :  { %v199_v34 = vpop.xlane.xlu0 %198  ;;  %v191_v35 = vpop.xlane.xlu1 %190 }
 0x1e5   :  { %v203_v37 = vmul.f32 0.03125, %v191_v35  ;;  %v205_v38 = vmul.f32 0.03125, %v199_v34 }
 0x1e7   :  { %v207_v39 = vmul.f32 %v203_v37, %v203_v37  ;;  %v211_v47 = vsub.f32 %v178_v22, %v203_v37 }
 0x1e8   :  { %v202_v40 = vpop.xlane.xlu1 %201 }
 0x1e9   :  { %v209_v42 = vsub.f32 %v205_v38, %v207_v39  ;;  %v206_v43 = vmul.f32 0.03125, %v202_v40 }
 0x1eb   :  { %v213_v44 = vadd.f32 1e-06, %v209_v42  ;;  %v210_v45 = vsub.f32 %v206_v43, %v208_v41 }
 0x1ed   :  { %4185 = vrsqrt.f32 %v213_v44  ;;  %v214_v46 = vadd.f32 1e-06, %v210_v45 }
 0x1ef   :  { %4187 = vrsqrt.f32 %v214_v46 }
 0x1fa   :  { %v4186_v48 = vpop.eup %4185 }
 0x1fb   :  { %v217_v51 = vmul.f32 %v4186_v48, %v211_v47 }
 0x1fc   :  { %v4188_v52 = vpop.eup %4187 }
 0x1fd   :  { %v218_v54 = vmul.f32 %v4188_v52, %v212_v50  ;;  %v225_v55 = vmul.f32 %v3505_v49, %v217_v51 }
 0x1ff   :  { %v226_v56 = vmul.f32 %v3505_v49, %v218_v54  ;;  %v4492_v57 = vadd.f32 %v3506_v53, %v225_v55  ;;  %v249_v54 = vld [vmem:[%s5155_s9 + $0x10] sm:$0xff]  ;;  %v248_v55 = vld [vmem:[%s5155_s9 + $0x8] sm:$0xff] }
 0x201   :  { %v4494_v58 = vadd.f32 %v3506_v53, %v226_v56  ;;  %3861 = vmatprep.mubr.msk.f32.mxu1 %vm188_vm4, %v4492_v57  ;;  %v250_v53 = vld [vmem:[%s5155_s9 + $0x18] sm:$0xff]  ;;  %v247_v56 = vld [vmem:[%s5155_s9] sm:$0xff] }
 0x203   :  { %3862 = vmatmul.mubr.msk.f32.vlgmr.msra.gmra.mxu1 %vm188_vm4, %v4494_v58 }
 0x2c3   :  { %v4500_v59 = vpop.f32.mrf.mxu1 }
 0x2c4   :  { %338 = vrot.lane.b32.xlu1 %v4500_v59, %s4308_s18 }
 0x2c5   :  { %v4504_v60 = vpop.f32.mrf.mxu1 }
 0x2c6   :  { %533 = vrot.lane.b32.xlu0 %v4504_v60, %s4309_s2  ;;  %3868 = vmatprep.mubr.msk.f32.mxu1 %vm340_vm5, %v4504_v60 }
 0x2c8   :  { %336 = vrot.lane.b32.xlu1 %v4504_v60, %s4308_s18 }
 0x2cc   :  { %539 = vrot.lane.b32.xlu1 %v4500_v59, %s4310_s6 }
 0x2d0   :  { %537 = vrot.lane.b32.xlu1 %v4504_v60, %s4310_s6 }
 0x2d4   :  { %535 = vrot.lane.b32.xlu1 %v4500_v59, %s4309_s2 }
 0x336   :  { %v339_v61 = vpop.permute.xlu1 %338 }
 0x337   :  { %3864 = vmatprep.subr.msk.mxu1 %vm340_vm5, %v339_v61 }
 0x338   :  { %3865 = vmatpush3.xpose.msk.msra.mxu1 %vm340_vm5, %v339_v61  ;;  %v534_v0 = vpop.permute.xlu0 %533 }
 0x33a   :  { %v337_v62 = vpop.permute.xlu1 %336 }
 0x33b   :  { %3866 = vmatprep.subr.msk.mxu1 %vm340_vm5, %v337_v62 }
 0x33c   :  { %3867 = vmatpush3.xpose.msk.msra.mxu1 %vm340_vm5, %v337_v62 }
 0x33e   :  { %v540_v63 = vpop.permute.xlu1 %539 }
 0x33f   :  { %3869 = vmatmul.mubr.msk.f32.vlgmr.msra.gmra.mxu1 %vm340_vm5, %v4500_v59  ;;  %3878 = vmatprep.subr.msk.mxu1 %vm340_vm5, %v540_v63 }
 0x340   :  { %3879 = vmatpush3.xpose.msk.msra.mxu1 %vm340_vm5, %v540_v63  ;;  %3882 = vmatprep.mubr.msk.f32.mxu1 %vm340_vm5, %v534_v0 }
 0x342   :  { %v538_v1 = vpop.permute.xlu1 %537 }
 0x343   :  { %3880 = vmatprep.subr.msk.mxu1 %vm340_vm5, %v538_v1 }
 0x344   :  { %3881 = vmatpush3.xpose.msk.msra.mxu1 %vm340_vm5, %v538_v1 }
 0x346   :  { %v536_v2 = vpop.permute.xlu1 %535 }
 0x347   :  { %3883 = vmatmul.mubr.msk.f32.vlgmr.msra.gmra.mxu1 %vm340_vm5, %v536_v2 }
 0x3ff   :  { %v3870_v4 = vpop.f32.mrf.mxu1 }
 0x400   :  { %v421_v6 = vadd.f32 %v3870_v4, %v240_v3  ;;  %v876_v4 = vld [vmem:[%s5159_s13 + $0x10] sm:$0xff] }
 0x401   :  { %v415_v7 = vpop.f32.mrf.mxu1 }
 0x402   :  { %v416_v8 = vadd.f32 %v415_v7, %v239_v5  ;;  %v427_v9 = vsel %vm340_vm5, %v421_v6, -inf }
 0x403   :  { %428 = vmax.xlane.f32.xlu0 %v427_v9 }
 0x404   :  { %v424_v10 = vsel %vm340_vm5, %v416_v8, -inf }
 0x405   :  { %425 = vmax.xlane.f32.xlu1 %v424_v10 }
 0x407   :  { %v3884_v11 = vpop.f32.mrf.mxu1 }
 0x408   :  { %v621_v12 = vadd.f32 %v3884_v11, %v240_v3  ;;  %v877_v3 = vld [vmem:[%s5159_s13 + $0x18] sm:$0xff] }
 0x409   :  { %v615_v13 = vpop.f32.mrf.mxu1 }
 0x40a   :  { %v616_v14 = vadd.f32 %v615_v13, %v239_v5  ;;  %v627_v15 = vsel %vm340_vm5, %v621_v12, -inf  ;;  %v875_v5 = vld [vmem:[%s5159_s13 + $0x8] sm:$0xff] }
 0x40b   :  { %628 = vmax.xlane.f32.xlu1 %v627_v15 }
 0x40c   :  { %v624_v16 = vsel %vm340_vm5, %v616_v14, -inf }
 0x40f   :  { %625 = vmax.xlane.f32.xlu1 %v624_v16  ;;  %v236_v16 = vld [vmem:[%s5196_s30 + $0x8] sm:$0xff] }
 0x420   :  { %448 = vrot.lane.b32.xlu1 %v4500_v59, %s4311_s0 }
 0x48c   :  { %v429_v17 = vpop.xlane.xlu0 %428 }
 0x48d   :  { %v431_v18 = vsub.f32 %v421_v6, %v429_v17  ;;  %v237_v17 = vld [vmem:[%s5196_s30 + $0x10] sm:$0xff] }
 0x48e   :  { %v426_v19 = vpop.xlane.xlu1 %425 }
 0x48f   :  { %v434_v20 = vmul.f32 1.442695, %v431_v18  ;;  %v430_v21 = vsub.f32 %v416_v8, %v426_v19  ;;  %v238_v18 = vld [vmem:[%s5196_s30 + $0x18] sm:$0xff] }
 0x490   :  { %v873_v19 = vld [vmem:[%s5158_s12 + $0x18] sm:$0xff] }
 0x491   :  { %4189 = vpow2.f32 %v434_v20  ;;  %v432_v22 = vmul.f32 1.442695, %v430_v21  ;;  %v872_v20 = vld [vmem:[%s5158_s12 + $0x10] sm:$0xff]  ;;  %3903 = vmatprep.subr.mxu1 %v873_v19  ;;  %v871_v21 = vld [vmem:[%s5158_s12 + $0x8] sm:$0xff] }
 0x492   :  { %3904 = vmatpush3.msra.mxu1 %v873_v19 }
 0x493   :  { %4191 = vpow2.f32 %v432_v22  ;;  %3905 = vmatprep.subr.mxu1 %v872_v20  ;;  %v870_v22 = vld [vmem:[%s5158_s12] sm:$0xff] }
 0x494   :  { %v629_v23 = vpop.xlane.xlu1 %628  ;;  %3906 = vmatpush3.msra.mxu1 %v872_v20 }
 0x495   :  { %v631_v24 = vsub.f32 %v621_v12, %v629_v23  ;;  %3907 = vmatprep.subr.mxu1 %v871_v21 }
 0x496   :  { %3908 = vmatpush3.msra.mxu1 %v871_v21 }
 0x497   :  { %v634_v25 = vmul.f32 1.442695, %v631_v24  ;;  %3909 = vmatprep.subr.mxu1 %v870_v22 }
 0x498   :  { %v626_v26 = vpop.xlane.xlu1 %625  ;;  %3910 = vmatpush3.msra.mxu1 %v870_v22 }
 0x499   :  { %4193 = vpow2.f32 %v634_v25  ;;  %v630_v34 = vsub.f32 %v616_v14, %v626_v26 }
 0x49b   :  { %v632_v35 = vmul.f32 1.442695, %v630_v34 }
 0x49c   :  { %v449_v27 = vpop.permute.xlu1 %448 }
 0x49d   :  { %3871 = vmatprep.subr.mxu0 %v449_v27  ;;  %4195 = vpow2.f32 %v632_v35 }
 0x49e   :  { %v4190_v28 = vpop.eup %4189  ;;  %3872 = vmatpush3.msra.mxu0 %v449_v27 }
 0x49f   :  { %v439_v29 = vsel %vm340_vm5, %v4190_v28, 0.0 }
 0x4a0   :  { %v4192_v30 = vpop.eup %4191  ;;  %440 = vadd.xlane.f32.xlu0 %v439_v29 }
 0x4a1   :  { %v436_v31 = vsel %vm340_vm5, %v4192_v30, 0.0 }
 0x4a2   :  { %437 = vadd.xlane.f32.xlu1 %v436_v31 }
 0x4a6   :  { %v4194_v32 = vpop.eup %4193 }
 0x4a7   :  { %v639_v33 = vsel %vm340_vm5, %v4194_v32, 0.0 }
 0x4a8   :  { %640 = vadd.xlane.f32.xlu0 %v639_v33 }
 0x4aa   :  { %v4196_v36 = vpop.eup %4195 }
 0x4ab   :  { %v636_v37 = vsel %vm340_vm5, %v4196_v36, 0.0 }
 0x4b3   :  { %648 = vrot.lane.b32.xlu1 %v4500_v59, %s5177_s4 }
 0x4be   :  { %446 = vrot.lane.b32.xlu0 %v4504_v60, %s4311_s0 }
 0x4d7   :  { %637 = vadd.xlane.f32.xlu1 %v636_v37 }
 0x4e8   :  { %646 = vrot.lane.b32.xlu1 %v4504_v60, %s5177_s4 }
 0x529   :  { %v441_v38 = vpop.xlane.xlu0 %440 }
 0x52a   :  { %4197 = vrcp.f32 %v441_v38 }
 0x52b   :  { %v438_v39 = vpop.xlane.xlu1 %437 }
 0x52c   :  { %4199 = vrcp.f32 %v438_v39  ;;  %v3523_v39 = vld [vmem:[%s5156_s10] ss:$0 sm:$0xff] }
 0x52f   :  { %v649_v42 = vpop.permute.xlu1 %648 }
 0x531   :  { %v641_v40 = vpop.xlane.xlu0 %640 }
 0x532   :  { %4201 = vrcp.f32 %v641_v40 }
 0x535   :  { %v447_v41 = vpop.permute.xlu0 %446 }
 0x536   :  { %3873 = vmatprep.subr.mxu0 %v447_v41 }
 0x537   :  { %3874 = vmatpush3.msra.mxu0 %v447_v41  ;;  %v4198_v43 = vpop.eup %4197  ;;  %v3524_v41 = vld [vmem:[%s5157_s11] ss:$0 sm:$0xff] }
 0x538   :  { %3885 = vmatprep.subr.mxu0 %v649_v42  ;;  %v445_v46 = vmul.f32 %v4198_v43, %v4190_v28 }
 0x539   :  { %v4200_v44 = vpop.eup %4199 }
 0x53a   :  { %v444_v45 = vmul.f32 %v4200_v44, %v4192_v30 }
 0x53c   :  { %3875 = vmatprep.mubr.msk.f32.mxu0 %vm340_vm5, %v444_v45 }
 0x53d   :  { %3876 = vmatmul.mubr.msk.f32.vlgmr.msra.gmra.mxu0 %vm340_vm5, %v445_v46 }
 0x53e   :  { %3886 = vmatpush3.msra.mxu0 %v649_v42 }
 0x53f   :  { %v4202_v49 = vpop.eup %4201 }
 0x540   :  { %v645_v52 = vmul.f32 %v4202_v49, %v4194_v32 }
 0x560   :  { %v638_v47 = vpop.xlane.xlu1 %637 }
 0x561   :  { %4203 = vrcp.f32 %v638_v47 }
 0x564   :  { %v647_v48 = vpop.permute.xlu1 %646 }
 0x565   :  { %3887 = vmatprep.subr.mxu0 %v647_v48 }
 0x566   :  { %3888 = vmatpush3.msra.mxu0 %v647_v48 }
 0x567   :  { %3892 = vmatprep.subr.mxu0 %v250_v53 }
 0x56e   :  { %v4204_v50 = vpop.eup %4203 }
 0x56f   :  { %v644_v51 = vmul.f32 %v4204_v50, %v4196_v36 }
 0x571   :  { %3889 = vmatprep.mubr.msk.f32.mxu0 %vm340_vm5, %v644_v51 }
 0x572   :  { %3890 = vmatmul.mubr.msk.f32.vlgmr.msra.gmra.mxu0 %vm340_vm5, %v645_v52 }
 0x573   :  { %3893 = vmatpush3.msra.mxu0 %v250_v53 }
 0x574   :  { %3894 = vmatprep.subr.mxu0 %v249_v54 }
 0x575   :  { %3895 = vmatpush3.msra.mxu0 %v249_v54 }
 0x576   :  { %3896 = vmatprep.subr.mxu0 %v248_v55 }
 0x577   :  { %3897 = vmatpush3.msra.mxu0 %v248_v55  ;;  %v4666_v55 = vld [vmem:[%s5197_s26 + $0x8] sm:$0xff] }
 0x578   :  { %3898 = vmatprep.subr.mxu0 %v247_v56 }
 0x579   :  { %3899 = vmatpush3.msra.mxu0 %v247_v56 }
 0x57a   :  { %3914 = vmatprep.subr.mxu0 %v877_v3 }
 0x5fd   :  { %v3877_v59 = vpop.f32.mrf.mxu0 }
 0x5ff   :  { %v524_v60 = vpop.f32.mrf.mxu0 }
 0x632   :  { %v3891_v61 = vpop.f32.mrf.mxu0 }
 0x633   :  { %737 = vrot.lane.b32.xlu1 %v3891_v61, %s5179_s29 }
 0x634   :  { %v724_v62 = vpop.f32.mrf.mxu0 }
 0x635   :  { %735 = vrot.lane.b32.xlu0 %v724_v62, %s5179_s29 }
 0x6a5   :  { %v738_v63 = vpop.permute.xlu1 %737 }
 0x6a6   :  { %v742_v2 = vsel %vm340_vm5, %v3877_v59, %v738_v63  ;;  %v4671_v59 = vld [vmem:[%s5197_s26] sm:$0xff] }
 0x6a7   :  { %v736_v0 = vpop.permute.xlu0 %735 }
 0x6a8   :  { %v741_v1 = vsel %vm340_vm5, %v524_v60, %v736_v0 }
 0x6a9   :  { %3900 = vmatprep.mubr.msk.f32.mxu0 %vm188_vm4, %v741_v1 }
 0x6aa   :  { %3901 = vmatmul.mubr.msk.f32.vlgmr.msra.gmra.mxu0 %vm188_vm4, %v742_v2 }
 0x6ab   :  { %3915 = vmatpush3.msra.mxu0 %v877_v3 }
 0x6ac   :  { %3916 = vmatprep.subr.mxu0 %v876_v4 }
 0x6ad   :  { %3917 = vmatpush3.msra.mxu0 %v876_v4 }
 0x6ae   :  { %3918 = vmatprep.subr.mxu0 %v875_v5 }
 0x6af   :  { %3919 = vmatpush3.msra.mxu0 %v875_v5 }
 0x76a   :  { %v3902_v6 = vpop.f32.mrf.mxu0 }
 0x76b   :  { %v821_v7 = vadd.f32 %v3902_v6, %v4494_v58  ;;  %v874_v58 = vld [vmem:[%s5159_s13] sm:$0xff] }
 0x76c   :  { %v815_v8 = vpop.f32.mrf.mxu0  ;;  %3920 = vmatprep.subr.mxu0 %v874_v58 }
 0x76d   :  { %v816_v9 = vadd.f32 %v815_v8, %v4492_v57  ;;  %v827_v10 = vsel %vm188_vm4, %v821_v7, 0.0  ;;  %v831_v14 = vmul.f32 %v821_v7, %v821_v7  ;;  %v4595_v57 = vld [vmem:[%s5196_s30] sm:$0xff]  ;;  %3921 = vmatpush3.msra.mxu0 %v874_v58 }
 0x76e   :  { %828 = vadd.xlane.f32.xlu1 %v827_v10  ;;  %3922 = vmatprep.mubr.msk.f32.mxu0 %vm188_vm4, %v4595_v57 }
 0x76f   :  { %v824_v11 = vsel %vm188_vm4, %v816_v9, 0.0  ;;  %v830_v12 = vmul.f32 %v816_v9, %v816_v9  ;;  %v835_v15 = vsel %vm188_vm4, %v831_v14, 0.0  ;;  %3923 = vmatmul.mubr.msk.f32.vlgmr.msra.gmra.mxu0 %vm188_vm4, %v236_v16 }
 0x770   :  { %825 = vadd.xlane.f32.xlu0 %v824_v11  ;;  %3925 = vmatprep.mubr.msk.f32.mxu0 %vm188_vm4, %v237_v17 }
 0x771   :  { %v832_v13 = vsel %vm188_vm4, %v830_v12, 0.0 }
 0x773   :  { %3926 = vmatmul.mubr.msk.f32.gmra.mxu0 %vm188_vm4, %v238_v18 }
 0x774   :  { %833 = vadd.xlane.f32.xlu0 %v832_v13 }
 0x778   :  { %836 = vadd.xlane.f32.xlu0 %v835_v15 }
 0x7f7   :  { %v829_v25 = vpop.xlane.xlu1 %828 }
 0x7f8   :  { %v839_v27 = vmul.f32 0.03125, %v829_v25 }
 0x7f9   :  { %v826_v23 = vpop.xlane.xlu0 %825 }
 0x7fa   :  { %v838_v24 = vmul.f32 0.03125, %v826_v23  ;;  %v843_v32 = vmul.f32 %v839_v27, %v839_v27  ;;  %v847_v42 = vsub.f32 %v821_v7, %v839_v27 }
 0x7fc   :  { %v842_v28 = vmul.f32 %v838_v24, %v838_v24  ;;  %v846_v37 = vsub.f32 %v816_v9, %v838_v24 }
 0x7fd   :  { %v834_v26 = vpop.xlane.xlu0 %833 }
 0x7fe   :  { %v840_v29 = vmul.f32 0.03125, %v834_v26 }
 0x800   :  { %v844_v30 = vsub.f32 %v840_v29, %v842_v28 }
 0x801   :  { %v837_v31 = vpop.xlane.xlu0 %836 }
 0x802   :  { %v848_v33 = vadd.f32 1e-06, %v844_v30  ;;  %v841_v34 = vmul.f32 0.03125, %v837_v31 }
 0x804   :  { %4205 = vrsqrt.f32 %v848_v33  ;;  %v845_v35 = vsub.f32 %v841_v34, %v843_v32 }
 0x806   :  { %v849_v36 = vadd.f32 1e-06, %v845_v35 }
 0x808   :  { %4207 = vrsqrt.f32 %v849_v36 }
 0x811   :  { %v4206_v38 = vpop.eup %4205 }
 0x812   :  { %v852_v40 = vmul.f32 %v4206_v38, %v846_v37 }
 0x814   :  { %v860_v43 = vmul.f32 %v3523_v39, %v852_v40 }
 0x815   :  { %v4208_v44 = vpop.eup %4207 }
 0x816   :  { %v853_v45 = vmul.f32 %v4208_v44, %v847_v42  ;;  %v4629_v46 = vadd.f32 %v3524_v41, %v860_v43 }
 0x818   :  { %v861_v47 = vmul.f32 %v3523_v39, %v853_v45  ;;  %3911 = vmatprep.mubr.msk.f32.mxu1 %vm188_vm4, %v4629_v46 }
 0x81a   :  { %v4633_v48 = vadd.f32 %v3524_v41, %v861_v47 }
 0x81c   :  { %3912 = vmatmul.mubr.msk.f32.vlgmr.msra.gmra.mxu1 %vm188_vm4, %v4633_v48 }
 0x82f   :  { %v4637_v49 = vpop.f32.mrf.mxu0 }
 0x831   :  { %v4639_v50 = vpop.f32.mrf.mxu0 }
 0x833   :  { %v4641_v51 = vpop.f32.mrf.mxu0 }
 0x834   :  { %3928 = vmatprep.subr.msk.mxu1 %vm340_vm5, %v4641_v51 }
 0x835   :  { %3929 = vmatpush3.xpose.msk.msra.mxu1 %vm340_vm5, %v4641_v51  ;;  %v4647_v52 = vpop.f32.mrf.mxu0 }
 0x836   :  { %3930 = vmatprep.subr.msk.mxu1 %vm340_vm5, %v4647_v52 }
 0x839   :  { %3931 = vmatpush3.xpose.msk.msra.mxu1 %vm340_vm5, %v4647_v52 }
 0x83a   :  { %3932 = vmatprep.subr.msk.mxu1 %vm340_vm5, %v4637_v49 }
 0x83d   :  { %3933 = vmatpush3.xpose.msk.msra.mxu1 %vm340_vm5, %v4637_v49 }
 0x83e   :  { %3934 = vmatprep.subr.msk.mxu1 %vm340_vm5, %v4639_v50 }
 0x841   :  { %3935 = vmatpush3.xpose.msk.msra.mxu1 %vm340_vm5, %v4639_v50 }
 0x8dc   :  { %v3913_v53 = vpop.f32.mrf.mxu1 }
 0x8de   :  { %v956_v54 = vpop.f32.mrf.mxu1 }
 0x8df   :  { %3936 = vmatprep.mubr.msk.f32.mxu1 %vm340_vm5, %v956_v54 }
 0x8e0   :  { %3937 = vmatmul.mubr.msk.f32.vlgmr.msra.gmra.mxu1 %vm340_vm5, %v3913_v53 }
 0x9a0   :  { %v3938_v56 = vpop.f32.mrf.mxu1 }
 0x9a1   :  { %v1152_v60 = vadd.f32 %v3938_v56, %v4666_v55 }
 0x9a2   :  { %v1146_v61 = vpop.f32.mrf.mxu1 }
 0x9a3   :  { %v1147_v62 = vadd.f32 %v1146_v61, %v4671_v59  ;;  %v1158_v63 = vsel %vm188_vm4, %v1152_v60, -inf  ;;  %v878_v61 = vld [vmem:[%s5160_s14] sm:$0xff] }
 0x9a4   :  { %1159 = vmax.xlane.f32.xlu0 %v1158_v63 }
 0x9a5   :  { %v1155_v0 = vsel %vm188_vm4, %v1147_v62, -inf }
 0x9a6   :  { %1156 = vmax.xlane.f32.xlu1 %v1155_v0 }
 0x9b7   :  { %1183 = vrot.lane.b32.xlu1 %v4641_v51, %s4308_s18 }
 0x9ba   :  { %1181 = vrot.lane.b32.xlu0 %v4647_v52, %s4308_s18 }
 0x9bb   :  { %1179 = vrot.lane.b32.xlu1 %v4637_v49, %s4308_s18 }
 0x9bf   :  { %1177 = vrot.lane.b32.xlu1 %v4639_v50, %s4308_s18 }
 0xa2d   :  { %v1160_v1 = vpop.xlane.xlu0 %1159 }
 0xa2e   :  { %v1162_v2 = vsub.f32 %v1152_v60, %v1160_v1  ;;  %v879_v60 = vld [vmem:[%s5160_s14 + $0x8] sm:$0xff] }
 0xa2f   :  { %v1157_v3 = vpop.xlane.xlu1 %1156 }
 0xa30   :  { %v1165_v4 = vmul.f32 1.442695, %v1162_v2  ;;  %v1161_v5 = vsub.f32 %v1147_v62, %v1157_v3 }
 0xa31   :  { %v1182_v8 = vpop.permute.xlu0 %1181 }
 0xa32   :  { %4209 = vpow2.f32 %v1165_v4  ;;  %v1163_v6 = vmul.f32 1.442695, %v1161_v5 }
 0xa33   :  { %v1184_v7 = vpop.permute.xlu1 %1183 }
 0xa34   :  { %4211 = vpow2.f32 %v1163_v6  ;;  %3939 = vmatprep.subr.mxu0 %v1184_v7 }
 0xa35   :  { %3940 = vmatpush3.msra.mxu0 %v1184_v7 }
 0xa36   :  { %3941 = vmatprep.subr.mxu0 %v1182_v8 }
 0xa37   :  { %3942 = vmatpush3.msra.mxu0 %v1182_v8  ;;  %v1180_v9 = vpop.permute.xlu1 %1179 }
 0xa38   :  { %3943 = vmatprep.subr.mxu0 %v1180_v9 }
 0xa39   :  { %3944 = vmatpush3.msra.mxu0 %v1180_v9 }
 0xa3b   :  { %v1178_v10 = vpop.permute.xlu1 %1177 }
 0xa3c   :  { %3945 = vmatprep.subr.mxu0 %v1178_v10 }
 0xa3d   :  { %3946 = vmatpush3.msra.mxu0 %v1178_v10 }
 0xa3f   :  { %v4210_v11 = vpop.eup %4209 }
 0xa40   :  { %v1170_v12 = vsel %vm188_vm4, %v4210_v11, 0.0 }
 0xa41   :  { %v4212_v13 = vpop.eup %4211  ;;  %1171 = vadd.xlane.f32.xlu0 %v1170_v12 }
 0xa42   :  { %v1167_v14 = vsel %vm188_vm4, %v4212_v13, 0.0 }
 0xa43   :  { %1168 = vadd.xlane.f32.xlu1 %v1167_v14  ;;  %v1622_v14 = vld [vmem:[%s5163_s17 + $0x8] sm:$0xff] }
 0xa54   :  { %1278 = vrot.lane.b32.xlu1 %v4647_v52, %s4309_s2 }
 0xa57   :  { %1280 = vrot.lane.b32.xlu0 %v4641_v51, %s4309_s2 }
 0xa58   :  { %1274 = vrot.lane.b32.xlu1 %v4639_v50, %s4309_s2 }
 0xa5b   :  { %1276 = vrot.lane.b32.xlu0 %v4637_v49, %s4309_s2 }
 0xa5c   :  { %1272 = vrot.lane.b32.xlu1 %v3913_v53, %s4309_s2 }
 0xa5f   :  { %1270 = vrot.lane.b32.xlu0 %v956_v54, %s4309_s2 }
 0xaca   :  { %v1172_v15 = vpop.xlane.xlu0 %1171 }
 0xacb   :  { %4213 = vrcp.f32 %v1172_v15  ;;  %v1621_v15 = vld [vmem:[%s5163_s17] sm:$0xff] }
 0xacc   :  { %v1169_v58 = vpop.xlane.xlu1 %1168 }
 0xacd   :  { %4215 = vrcp.f32 %v1169_v58  ;;  %v1633_v58 = vld [vmem:[%s5165_s19 + $0x38] sm:$0xff] }
 0xace   :  { %v1281_v16 = vpop.permute.xlu0 %1280 }
 0xacf   :  { %3950 = vmatprep.subr.msk.mxu0 %vm340_vm5, %v1281_v16 }
 0xad0   :  { %v1279_v23 = vpop.permute.xlu1 %1278 }
 0xad2   :  { %v1277_v17 = vpop.permute.xlu0 %1276 }
 0xad4   :  { %v1275_v24 = vpop.permute.xlu1 %1274 }
 0xad6   :  { %v1271_v22 = vpop.permute.xlu0 %1270 }
 0xad8   :  { %v4214_v18 = vpop.eup %4213  ;;  %v1273_v25 = vpop.permute.xlu1 %1272 }
 0xad9   :  { %v1176_v21 = vmul.f32 %v4214_v18, %v4210_v11  ;;  %v1630_v18 = vld [vmem:[%s5165_s19 + $0x20] sm:$0xff] }
 0xada   :  { %v4216_v19 = vpop.eup %4215 }
 0xadb   :  { %v1175_v20 = vmul.f32 %v4216_v19, %v4212_v13 }
 0xadd   :  { %3947 = vmatprep.mubr.msk.f32.mxu0 %vm188_vm4, %v1175_v20 }
 0xade   :  { %3948 = vmatmul.mubr.msk.f32.vlgmr.msra.gmra.mxu0 %vm188_vm4, %v1176_v21 }
 0xadf   :  { %3951 = vmatpush3.xpose.msk.msra.mxu0 %vm340_vm5, %v1281_v16  ;;  %3958 = vmatprep.mubr.msk.f32.mxu0 %vm340_vm5, %v1271_v22  ;;  %v1632_v16 = vld [vmem:[%s5165_s19 + $0x30] sm:$0xff] }
 0xae0   :  { %3952 = vmatprep.subr.msk.mxu0 %vm340_vm5, %v1279_v23 }
 0xae3   :  { %3953 = vmatpush3.xpose.msk.msra.mxu0 %vm340_vm5, %v1279_v23 }
 0xae4   :  { %3954 = vmatprep.subr.msk.mxu0 %vm340_vm5, %v1277_v17 }
 0xae7   :  { %3955 = vmatpush3.xpose.msk.msra.mxu0 %vm340_vm5, %v1277_v17  ;;  %v1631_v17 = vld [vmem:[%s5165_s19 + $0x28] sm:$0xff] }
 0xae8   :  { %3956 = vmatprep.subr.msk.mxu0 %vm340_vm5, %v1275_v24 }
 0xaeb   :  { %3957 = vmatpush3.xpose.msk.msra.mxu0 %vm340_vm5, %v1275_v24 }
 0xaee   :  { %3959 = vmatmul.mubr.msk.f32.vlgmr.msra.gmra.mxu0 %vm340_vm5, %v1273_v25 }
 0xb9e   :  { %v4709_v26 = vpop.f32.mrf.mxu0 }
 0xba0   :  { %v4711_v27 = vpop.f32.mrf.mxu0 }
 0xbae   :  { %v3960_v28 = vpop.f32.mrf.mxu0 }
 0xbaf   :  { %v1366_v29 = vadd.f32 %v3960_v28, %v4666_v55 }
 0xbb0   :  { %v1360_v30 = vpop.f32.mrf.mxu0 }
 0xbb1   :  { %v1361_v31 = vadd.f32 %v1360_v30, %v4671_v59  ;;  %v1372_v32 = vsel %vm188_vm4, %v1366_v29, -inf  ;;  %v880_v59 = vld [vmem:[%s5160_s14 + $0x10] sm:$0xff] }
 0xbb2   :  { %1373 = vmax.xlane.f32.xlu1 %v1372_v32 }
 0xbb3   :  { %v1369_v33 = vsel %vm188_vm4, %v1361_v31, -inf }
 0xbb4   :  { %1370 = vmax.xlane.f32.xlu0 %v1369_v33 }
 0xbc3   :  { %1397 = vrot.lane.b32.xlu1 %v4641_v51, %s4310_s6 }
 0xbc7   :  { %1393 = vrot.lane.b32.xlu1 %v4637_v49, %s4310_s6 }
 0xbcb   :  { %1391 = vrot.lane.b32.xlu1 %v4639_v50, %s4310_s6 }
 0xc3b   :  { %v1374_v34 = vpop.xlane.xlu1 %1373 }
 0xc3c   :  { %v1376_v35 = vsub.f32 %v1366_v29, %v1374_v34 }
 0xc3d   :  { %v1371_v36 = vpop.xlane.xlu0 %1370 }
 0xc3e   :  { %v1379_v37 = vmul.f32 1.442695, %v1376_v35  ;;  %v1375_v38 = vsub.f32 %v1361_v31, %v1371_v36  ;;  %v3549_v35 = vld [vmem:[%s5161_s15] ss:$0 sm:$0xff] }
 0xc3f   :  { %v1398_v39 = vpop.permute.xlu1 %1397 }
 0xc40   :  { %4217 = vpow2.f32 %v1379_v37  ;;  %v1377_v40 = vmul.f32 1.442695, %v1375_v38  ;;  %3961 = vmatprep.subr.mxu1 %v1398_v39  ;;  %v3550_v37 = vld [vmem:[%s5162_s16] ss:$0 sm:$0xff] }
 0xc41   :  { %3962 = vmatpush3.msra.mxu1 %v1398_v39 }
 0xc42   :  { %4219 = vpow2.f32 %v1377_v40 }
 0xc43   :  { %v1394_v49 = vpop.permute.xlu1 %1393 }
 0xc47   :  { %v1392_v51 = vpop.permute.xlu1 %1391 }
 0xc4d   :  { %v4218_v41 = vpop.eup %4217 }
 0xc4e   :  { %v1384_v42 = vsel %vm188_vm4, %v4218_v41, 0.0 }
 0xc4f   :  { %v4220_v43 = vpop.eup %4219  ;;  %1385 = vadd.xlane.f32.xlu0 %v1384_v42 }
 0xc50   :  { %v1381_v44 = vsel %vm188_vm4, %v4220_v43, 0.0 }
 0xc53   :  { %1382 = vadd.xlane.f32.xlu0 %v1381_v44 }
 0xc69   :  { %1395 = vrot.lane.b32.xlu0 %v4647_v52, %s4310_s6  ;;  %v881_v52 = vld [vmem:[%s5160_s14 + $0x18] sm:$0xff] }
 0xcd8   :  { %v1386_v45 = vpop.xlane.xlu0 %1385 }
 0xcd9   :  { %4221 = vrcp.f32 %v1386_v45  ;;  %v1629_v45 = vld [vmem:[%s5165_s19 + $0x18] sm:$0xff] }
 0xcdc   :  { %v1383_v47 = vpop.xlane.xlu0 %1382 }
 0xcdd   :  { %4223 = vrcp.f32 %v1383_v47  ;;  %v1628_v47 = vld [vmem:[%s5165_s19 + $0x10] sm:$0xff] }
 0xce0   :  { %v1396_v50 = vpop.permute.xlu0 %1395 }
 0xce1   :  { %3963 = vmatprep.subr.mxu1 %v1396_v50 }
 0xce2   :  { %3964 = vmatpush3.msra.mxu1 %v1396_v50  ;;  %v1626_v50 = vld [vmem:[%s5165_s19] sm:$0xff] }
 0xce3   :  { %3965 = vmatprep.subr.mxu1 %v1394_v49 }
 0xce4   :  { %3966 = vmatpush3.msra.mxu1 %v1394_v49  ;;  %v1627_v49 = vld [vmem:[%s5165_s19 + $0x8] sm:$0xff] }
 0xce5   :  { %3967 = vmatprep.subr.mxu1 %v1392_v51 }
 0xce6   :  { %3968 = vmatpush3.msra.mxu1 %v1392_v51  ;;  %v4222_v53 = vpop.eup %4221 }
 0xce7   :  { %v1390_v56 = vmul.f32 %v4222_v53, %v4218_v41  ;;  %3972 = vmatprep.subr.mxu1 %v881_v52 }
 0xcea   :  { %v4224_v54 = vpop.eup %4223 }
 0xceb   :  { %v1389_v55 = vmul.f32 %v4224_v54, %v4220_v43 }
 0xced   :  { %3969 = vmatprep.mubr.msk.f32.mxu1 %vm188_vm4, %v1389_v55 }
 0xcee   :  { %3970 = vmatmul.mubr.msk.f32.vlgmr.msra.gmra.mxu1 %vm188_vm4, %v1390_v56 }
 0xcef   :  { %3973 = vmatpush3.msra.mxu1 %v881_v52 }
 0xcf0   :  { %3974 = vmatprep.subr.mxu1 %v880_v59 }
 0xcf1   :  { %3975 = vmatpush3.msra.mxu1 %v880_v59 }
 0xcf2   :  { %3976 = vmatprep.subr.mxu1 %v879_v60 }
 0xcf3   :  { %3977 = vmatpush3.msra.mxu1 %v879_v60  ;;  %v3554_v60 = vld [vmem:[%s5166_s20] ss:$0 sm:$0xff] }
 0xcf4   :  { %3978 = vmatprep.subr.mxu1 %v878_v61 }
 0xcf5   :  { %3979 = vmatpush3.msra.mxu1 %v878_v61 }
 0xcf6   :  { %3994 = vmatprep.subr.mxu1 %v1633_v58 }
 0xdae   :  { %v3971_v62 = vpop.f32.mrf.mxu1 }
 0xdaf   :  { %1488 = vrot.lane.b32.xlu1 %v3971_v62, %s5179_s29 }
 0xdb0   :  { %v1475_v63 = vpop.f32.mrf.mxu1 }
 0xdb1   :  { %1486 = vrot.lane.b32.xlu0 %v1475_v63, %s5179_s29  ;;  %s5198_s29 = sld [smem:[#allocation13_spill]] }
 0xdb7   :  { %v3551_v51 = vld [vmem:[%s5198_s29] ss:$0 sm:$0xff] }
 0xe21   :  { %v1489_v0 = vpop.permute.xlu1 %1488 }
 0xe22   :  { %v1493_v3 = vsel %vm340_vm5, %v4709_v26, %v1489_v0 }
 0xe23   :  { %v1487_v1 = vpop.permute.xlu0 %1486 }
 0xe24   :  { %v1492_v2 = vsel %vm340_vm5, %v4711_v27, %v1487_v1 }
 0xe25   :  { %3980 = vmatprep.mubr.msk.f32.mxu1 %vm188_vm4, %v1492_v2 }
 0xe26   :  { %3981 = vmatmul.mubr.msk.f32.vlgmr.msra.gmra.mxu1 %vm188_vm4, %v1493_v3 }
 0xe27   :  { %3995 = vmatpush3.msra.mxu1 %v1633_v58 }
 0xe28   :  { %3996 = vmatprep.subr.mxu1 %v1632_v16 }
 0xe29   :  { %3997 = vmatpush3.msra.mxu1 %v1632_v16 }
 0xe2a   :  { %3998 = vmatprep.subr.mxu1 %v1631_v17 }
 0xe2b   :  { %3999 = vmatpush3.msra.mxu1 %v1631_v17 }
 0xe2c   :  { %4000 = vmatprep.subr.mxu1 %v1630_v18 }
 0xe2d   :  { %4001 = vmatpush3.msra.mxu1 %v1630_v18 }
 0xe2e   :  { %4002 = vmatprep.subr.mxu1 %v1629_v45 }
 0xe2f   :  { %4003 = vmatpush3.msra.mxu1 %v1629_v45  ;;  %v4277_v45 = vld [vmem:[%s5195_s28 + $0x8] sm:$0xff] }
 0xe30   :  { %4004 = vmatprep.subr.mxu1 %v1628_v47 }
 0xe31   :  { %4005 = vmatpush3.msra.mxu1 %v1628_v47 }
 0xe32   :  { %4006 = vmatprep.subr.mxu1 %v1627_v49 }
 0xe33   :  { %4007 = vmatpush3.msra.mxu1 %v1627_v49 }
 0xe34   :  { %4008 = vmatprep.subr.mxu1 %v1626_v50 }
 0xe35   :  { %4009 = vmatpush3.msra.mxu1 %v1626_v50  ;;  %v4278_v50 = vld [vmem:[%s5195_s28] sm:$0xff]  ;;  %s5199_s28 = smov 48  }
 0xee6   :  { %v3982_v4 = vpop.f32.mrf.mxu1 }
 0xee7   :  { %v1572_v5 = vadd.f32 %v3982_v4, %v4633_v48  ;;  %v1624_v48 = vld [vmem:[%s5163_s17 + $0x18] sm:$0xff] }
 0xee8   :  { %v1566_v6 = vpop.f32.mrf.mxu1  ;;  %3983 = vmatprep.subr.mxu0 %v1624_v48 }
 0xee9   :  { %v1567_v7 = vadd.f32 %v1566_v6, %v4629_v46  ;;  %v1578_v8 = vsel %vm188_vm4, %v1572_v5, 0.0  ;;  %v1582_v12 = vmul.f32 %v1572_v5, %v1572_v5  ;;  %v1623_v46 = vld [vmem:[%s5163_s17 + $0x10] sm:$0xff]  ;;  %3984 = vmatpush3.msra.mxu0 %v1624_v48 }
 0xeea   :  { %1579 = vadd.xlane.f32.xlu1 %v1578_v8  ;;  %3985 = vmatprep.subr.mxu0 %v1623_v46 }
 0xeeb   :  { %v1575_v9 = vsel %vm188_vm4, %v1567_v7, 0.0  ;;  %v1581_v10 = vmul.f32 %v1567_v7, %v1567_v7  ;;  %v1586_v13 = vsel %vm188_vm4, %v1582_v12, 0.0  ;;  %3986 = vmatpush3.msra.mxu0 %v1623_v46  ;;  %v3559_v12 = vld [vmem:[%s5154_s8 + $0x20] sm:$0xff] }
 0xeec   :  { %1576 = vadd.xlane.f32.xlu0 %v1575_v9  ;;  %3987 = vmatprep.subr.mxu0 %v1622_v14  ;;  %v3562_v9 = vld [vmem:[%s5154_s8 + $0x38] sm:$0xff] }
 0xeed   :  { %v1583_v11 = vsel %vm188_vm4, %v1581_v10, 0.0  ;;  %3988 = vmatpush3.msra.mxu0 %v1622_v14  ;;  %v3561_v10 = vld [vmem:[%s5154_s8 + $0x30] sm:$0xff] }
 0xeee   :  { %3989 = vmatprep.subr.mxu0 %v1621_v15 }
 0xeef   :  { %3990 = vmatpush3.msra.mxu0 %v1621_v15 }
 0xef0   :  { %1584 = vadd.xlane.f32.xlu0 %v1583_v11  ;;  %4013 = vmatprep.subr.mxu0 %v3562_v9  ;;  %v3560_v11 = vld [vmem:[%s5154_s8 + $0x28] sm:$0xff] }
 0xef4   :  { %1587 = vadd.xlane.f32.xlu0 %v1586_v13 }
 0xf73   :  { %v1580_v21 = vpop.xlane.xlu1 %1579 }
 0xf74   :  { %v1590_v23 = vmul.f32 0.03125, %v1580_v21 }
 0xf75   :  { %v1577_v19 = vpop.xlane.xlu0 %1576 }
 0xf76   :  { %v1589_v20 = vmul.f32 0.03125, %v1577_v19  ;;  %v1594_v28 = vmul.f32 %v1590_v23, %v1590_v23  ;;  %v1598_v38 = vsub.f32 %v1572_v5, %v1590_v23 }
 0xf78   :  { %v1593_v24 = vmul.f32 %v1589_v20, %v1589_v20  ;;  %v1597_v33 = vsub.f32 %v1567_v7, %v1589_v20 }
 0xf79   :  { %v1585_v22 = vpop.xlane.xlu0 %1584 }
 0xf7a   :  { %v1591_v25 = vmul.f32 0.03125, %v1585_v22 }
 0xf7c   :  { %v1595_v26 = vsub.f32 %v1591_v25, %v1593_v24 }
 0xf7d   :  { %v1588_v27 = vpop.xlane.xlu0 %1587 }
 0xf7e   :  { %v1599_v29 = vadd.f32 1e-06, %v1595_v26  ;;  %v1592_v30 = vmul.f32 0.03125, %v1588_v27  ;;  %v3557_v27 = vld [vmem:[%s5167_s21] ss:$0 sm:$0xff] }
 0xf80   :  { %4225 = vrsqrt.f32 %v1599_v29  ;;  %v1596_v31 = vsub.f32 %v1592_v30, %v1594_v28 }
 0xf82   :  { %v1600_v32 = vadd.f32 1e-06, %v1596_v31 }
 0xf84   :  { %4227 = vrsqrt.f32 %v1600_v32  ;;  %v3558_v32 = vld [vmem:[%s5168_s22] ss:$0 sm:$0xff] }
 0xf8d   :  { %v4226_v34 = vpop.eup %4225 }
 0xf8e   :  { %v1603_v36 = vmul.f32 %v4226_v34, %v1597_v33 }
 0xf90   :  { %v1611_v39 = vmul.f32 %v3549_v35, %v1603_v36 }
 0xf91   :  { %v4228_v40 = vpop.eup %4227 }
 0xf92   :  { %v1604_v41 = vmul.f32 %v4228_v40, %v1598_v38  ;;  %v1619_v42 = vadd.f32 %v3550_v37, %v1611_v39 }
 0xf94   :  { %v1612_v43 = vmul.f32 %v3549_v35, %v1604_v41  ;;  %3991 = vmatprep.mubr.msk.f32.mxu0 %vm188_vm4, %v1619_v42 }
 0xf96   :  { %v1620_v44 = vadd.f32 %v3550_v37, %v1612_v43 }
 0xf98   :  { %3992 = vmatmul.mubr.msk.f32.vlgmr.msra.gmra.mxu0 %vm188_vm4, %v1620_v44 }
 0xf99   :  { %4014 = vmatpush3.msra.mxu0 %v3562_v9 }
 0xf9a   :  { %4015 = vmatprep.subr.mxu0 %v3561_v10 }
 0xf9b   :  { %4016 = vmatpush3.msra.mxu0 %v3561_v10 }
 0xf9c   :  { %4017 = vmatprep.subr.mxu0 %v3560_v11 }
 0xf9d   :  { %4018 = vmatpush3.msra.mxu0 %v3560_v11 }
 0xf9e   :  { %4019 = vmatprep.subr.mxu0 %v3559_v12 }
 0xf9f   :  { %4020 = vmatpush3.msra.mxu0 %v3559_v12 }
0x1058   :  { %v3993_v53 = vpop.f32.mrf.mxu0 }
0x1059   :  { %v1721_v54 = vadd.f32 %v3993_v53, %v3551_v51 }
0x105a   :  { %v1715_v55 = vpop.f32.mrf.mxu0 }
0x105b   :  { %v1716_v56 = vadd.f32 %v3551_v51, %v1715_v55  ;;  %v1725_v59 = vmax.f32 %v1721_v54, 0.0 }
0x105d   :  { %v1724_v52 = vmax.f32 %v1716_v56, 0.0 }
0x105f   :  { %4010 = vmatprep.mubr.msk.f32.mxu1 %vm1732_vm6, %v1724_v52 }
0x1060   :  { %4011 = vmatmul.mubr.msk.f32.vlgmr.msra.gmra.mxu1 %vm1732_vm6, %v1725_v59 }
0x1120   :  { %v4012_v61 = vpop.f32.mrf.mxu1 }
0x1121   :  { %v1811_v62 = vadd.f32 %v4012_v61, %v3554_v60 }
0x1122   :  { %v1805_v63 = vpop.f32.mrf.mxu1 }
0x1123   :  { %v1815_v0 = vadd.f32 %v1811_v62, %v1620_v44  ;;  %v1806_v1 = vadd.f32 %v3554_v60, %v1805_v63 }
0x1125   :  { %v1814_v2 = vadd.f32 %v1806_v1, %v1619_v42  ;;  %v1819_v3 = vsel %vm188_vm4, %v1815_v0, 0.0  ;;  %v1823_v4 = vmul.f32 %v1815_v0, %v1815_v0 }
0x1126   :  { %1820 = vadd.xlane.f32.xlu0 %v1819_v3 }
0x1127   :  { %v1816_v5 = vsel %vm188_vm4, %v1814_v2, 0.0  ;;  %v1822_v6 = vmul.f32 %v1814_v2, %v1814_v2  ;;  %v1827_v7 = vsel %vm188_vm4, %v1823_v4, 0.0 }
0x1128   :  { %1817 = vadd.xlane.f32.xlu1 %v1816_v5 }
0x1129   :  { %v1824_v8 = vsel %vm188_vm4, %v1822_v6, 0.0 }
0x112a   :  { %1828 = vadd.xlane.f32.xlu0 %v1827_v7 }
0x112c   :  { %1825 = vadd.xlane.f32.xlu1 %v1824_v8 }
0x11af   :  { %v1821_v13 = vpop.xlane.xlu0 %1820 }
0x11b0   :  { %v1831_v48 = vmul.f32 0.03125, %v1821_v13 }
0x11b1   :  { %v1818_v46 = vpop.xlane.xlu1 %1817 }
0x11b2   :  { %v1830_v14 = vmul.f32 0.03125, %v1818_v46  ;;  %v1835_v58 = vmul.f32 %v1831_v48, %v1831_v48  ;;  %v1839_v24 = vsub.f32 %v1815_v0, %v1831_v48 }
0x11b3   :  { %v1829_v15 = vpop.xlane.xlu0 %1828 }
0x11b4   :  { %v1833_v16 = vmul.f32 0.03125, %v1829_v15  ;;  %v1834_v18 = vmul.f32 %v1830_v14, %v1830_v14  ;;  %v1838_v26 = vsub.f32 %v1814_v2, %v1830_v14 }
0x11b5   :  { %v1826_v17 = vpop.xlane.xlu1 %1825 }
0x11b6   :  { %v1837_v19 = vsub.f32 %v1833_v16, %v1835_v58  ;;  %v1832_v20 = vmul.f32 0.03125, %v1826_v17 }
0x11b8   :  { %v1841_v21 = vadd.f32 1e-06, %v1837_v19  ;;  %v1836_v22 = vsub.f32 %v1832_v20, %v1834_v18 }
0x11ba   :  { %4229 = vrsqrt.f32 %v1841_v21  ;;  %v1840_v23 = vadd.f32 1e-06, %v1836_v22 }
0x11bc   :  { %4231 = vrsqrt.f32 %v1840_v23 }
0x11c7   :  { %v4230_v25 = vpop.eup %4229 }
0x11c8   :  { %v1845_v28 = vmul.f32 %v4230_v25, %v1839_v24 }
0x11c9   :  { %v4232_v29 = vpop.eup %4231 }
0x11ca   :  { %v1844_v30 = vmul.f32 %v4232_v29, %v1838_v26  ;;  %v1853_v31 = vmul.f32 %v3557_v27, %v1845_v28 }
0x11cc   :  { %v1852_v33 = vmul.f32 %v3557_v27, %v1844_v30  ;;  %v4831_v35 = vadd.f32 %v3558_v32, %v1853_v31  ;;  %v3566_v31 = vld [vmem:[%s5155_s9 + $0x38] sm:$0xff] }
0x11ce   :  { %v4829_v34 = vadd.f32 %v3558_v32, %v1852_v33  ;;  %v3565_v32 = vld [vmem:[%s5155_s9 + $0x30] sm:$0xff]  ;;  %v3564_v33 = vld [vmem:[%s5155_s9 + $0x28] sm:$0xff] }
0x11d0   :  { %4021 = vmatprep.mubr.msk.f32.mxu0 %vm188_vm4, %v4829_v34 }
0x11d1   :  { %4022 = vmatmul.mubr.msk.f32.vlgmr.msra.gmra.mxu0 %vm188_vm4, %v4831_v35 }
0x1291   :  { %v4023_v36 = vpop.f32.mrf.mxu0 }
0x1292   :  { %1961 = vrot.lane.b32.xlu1 %v4023_v36, %s4308_s18 }
0x1293   :  { %v4838_v37 = vpop.f32.mrf.mxu0 }
0x1294   :  { %1959 = vrot.lane.b32.xlu0 %v4838_v37, %s4308_s18  ;;  %4028 = vmatprep.mubr.msk.f32.mxu0 %vm340_vm5, %v4838_v37 }
0x1296   :  { %2161 = vrot.lane.b32.xlu1 %v4023_v36, %s4310_s6 }
0x1298   :  { %2155 = vrot.lane.b32.xlu0 %v4838_v37, %s4309_s2 }
0x129a   :  { %2159 = vrot.lane.b32.xlu1 %v4838_v37, %s4310_s6 }
0x129e   :  { %2157 = vrot.lane.b32.xlu1 %v4023_v36, %s4309_s2 }
0x1304   :  { %v1962_v38 = vpop.permute.xlu1 %1961 }
0x1305   :  { %4024 = vmatprep.subr.msk.mxu0 %vm340_vm5, %v1962_v38 }
0x1306   :  { %4025 = vmatpush3.xpose.msk.msra.mxu0 %vm340_vm5, %v1962_v38  ;;  %v1960_v39 = vpop.permute.xlu0 %1959 }
0x1307   :  { %4026 = vmatprep.subr.msk.mxu0 %vm340_vm5, %v1960_v39 }
0x1308   :  { %v2162_v40 = vpop.permute.xlu1 %2161 }
0x1309   :  { %4038 = vmatprep.subr.msk.mxu1 %vm340_vm5, %v2162_v40 }
0x130a   :  { %4027 = vmatpush3.xpose.msk.msra.mxu0 %vm340_vm5, %v1960_v39  ;;  %4039 = vmatpush3.xpose.msk.msra.mxu1 %vm340_vm5, %v2162_v40  ;;  %v2156_v41 = vpop.permute.xlu0 %2155 }
0x130b   :  { %4042 = vmatprep.mubr.msk.f32.mxu1 %vm340_vm5, %v2156_v41 }
0x130c   :  { %v2160_v42 = vpop.permute.xlu1 %2159 }
0x130d   :  { %4029 = vmatmul.mubr.msk.f32.vlgmr.msra.gmra.mxu0 %vm340_vm5, %v4023_v36  ;;  %4040 = vmatprep.subr.msk.mxu1 %vm340_vm5, %v2160_v42 }
0x130e   :  { %4041 = vmatpush3.xpose.msk.msra.mxu1 %vm340_vm5, %v2160_v42 }
0x1310   :  { %v2158_v43 = vpop.permute.xlu1 %2157 }
0x1311   :  { %4043 = vmatmul.mubr.msk.f32.vlgmr.msra.gmra.mxu1 %vm340_vm5, %v2158_v43 }
0x13cd   :  { %v4030_v44 = vpop.f32.mrf.mxu0 }
0x13ce   :  { %v2043_v47 = vadd.f32 %v4277_v45, %v4030_v44 }
0x13cf   :  { %v2037_v49 = vpop.f32.mrf.mxu0 }
0x13d0   :  { %v2038_v51 = vadd.f32 %v4278_v50, %v2037_v49  ;;  %v2049_v53 = vsel %vm340_vm5, %v2043_v47, -inf  ;;  %v3592_v49 = vld [vmem:[%s5159_s13 + $0x28] sm:$0xff] }
0x13d1   :  { %v4044_v54 = vpop.f32.mrf.mxu1  ;;  %2050 = vmax.xlane.f32.xlu1 %v2049_v53 }
0x13d2   :  { %v2046_v55 = vsel %vm340_vm5, %v2038_v51, -inf  ;;  %v2243_v59 = vadd.f32 %v4277_v45, %v4044_v54  ;;  %v3594_v45 = vld [vmem:[%s5159_s13 + $0x38] sm:$0xff] }
0x13d3   :  { %v2237_v56 = vpop.f32.mrf.mxu1  ;;  %2047 = vmax.xlane.f32.xlu0 %v2046_v55 }
0x13d4   :  { %v2238_v52 = vadd.f32 %v4278_v50, %v2237_v56  ;;  %v2249_v61 = vsel %vm340_vm5, %v2243_v59, -inf }
0x13d6   :  { %v2246_v60 = vsel %vm340_vm5, %v2238_v52, -inf }
0x13d7   :  { %2247 = vmax.xlane.f32.xlu0 %v2246_v60 }
0x13db   :  { %2250 = vmax.xlane.f32.xlu0 %v2249_v61  ;;  %v4280_v61 = vld [vmem:[%s5196_s30 + $0x10] sm:$0xff] }
0x13e2   :  { %2070 = vrot.lane.b32.xlu1 %v4023_v36, %s4311_s0 }
0x13e6   :  { %2270 = vrot.lane.b32.xlu1 %v4023_v36, %s5199_s28  ;;  %v3563_v36 = vld [vmem:[%s5155_s9 + $0x20] sm:$0xff]  ;;  %s3489_s9 = sshll.u32 %s4314_s5, 4  ;;  %s3490_s9 = int_to_ptr.vmem [resolvable:$true] %s3489_s9 }
0x13e7   :  { %p4289_p1 = scmp.lt.s32.totalorder %s3490_s9, %s3490_s9 }
0x145a   :  { %v2051_v62 = vpop.xlane.xlu1 %2050 }
0x145b   :  { %v2053_v63 = vsub.f32 %v2043_v47, %v2051_v62  ;;  %v3593_v47 = vld [vmem:[%s5159_s13 + $0x30] sm:$0xff]  ;;  %v4281_v62 = vld [vmem:[%s5196_s30 + $0x18] sm:$0xff] }
0x145c   :  { %v2048_v0 = vpop.xlane.xlu0 %2047 }
0x145d   :  { %v2056_v1 = vmul.f32 1.442695, %v2053_v63  ;;  %v2052_v2 = vsub.f32 %v2038_v51, %v2048_v0  ;;  %v3590_v63 = vld [vmem:[%s5158_s12 + $0x38] sm:$0xff]  ;;  %v3589_v0 = vld [vmem:[%s5158_s12 + $0x30] sm:$0xff] }
0x145e   :  { %v2071_v3 = vpop.permute.xlu1 %2070  ;;  %4063 = vmatprep.subr.mxu1 %v3590_v63 }
0x145f   :  { %4233 = vpow2.f32 %v2056_v1  ;;  %v2054_v4 = vmul.f32 1.442695, %v2052_v2  ;;  %4031 = vmatprep.subr.mxu0 %v2071_v3  ;;  %4064 = vmatpush3.msra.mxu1 %v3590_v63  ;;  %v3588_v1 = vld [vmem:[%s5158_s12 + $0x28] sm:$0xff]  ;;  %v3587_v2 = vld [vmem:[%s5158_s12 + $0x20] sm:$0xff] }
0x1460   :  { %4032 = vmatpush3.msra.mxu0 %v2071_v3  ;;  %v2248_v5 = vpop.xlane.xlu0 %2247  ;;  %4065 = vmatprep.subr.mxu1 %v3589_v0 }
0x1461   :  { %4235 = vpow2.f32 %v2054_v4  ;;  %v2252_v6 = vsub.f32 %v2238_v52, %v2248_v5  ;;  %4066 = vmatpush3.msra.mxu1 %v3589_v0 }
0x1462   :  { %v2271_v16 = vpop.permute.xlu1 %2270  ;;  %4067 = vmatprep.subr.mxu1 %v3588_v1 }
0x1463   :  { %v2254_v7 = vmul.f32 1.442695, %v2252_v6  ;;  %4068 = vmatpush3.msra.mxu1 %v3588_v1 }
0x1464   :  { %v2251_v8 = vpop.xlane.xlu0 %2250  ;;  %4069 = vmatprep.subr.mxu1 %v3587_v2 }
0x1465   :  { %4237 = vpow2.f32 %v2254_v7  ;;  %v2253_v9 = vsub.f32 %v2243_v59, %v2251_v8  ;;  %4070 = vmatpush3.msra.mxu1 %v3587_v2 }
0x1467   :  { %v2256_v10 = vmul.f32 1.442695, %v2253_v9 }
0x1469   :  { %4239 = vpow2.f32 %v2256_v10 }
0x146c   :  { %v4234_v11 = vpop.eup %4233 }
0x146d   :  { %v2061_v12 = vsel %vm340_vm5, %v4234_v11, 0.0 }
0x146e   :  { %v4236_v13 = vpop.eup %4235  ;;  %2062 = vadd.xlane.f32.xlu0 %v2061_v12 }
0x146f   :  { %v2058_v48 = vsel %vm340_vm5, %v4236_v13, 0.0 }
0x1470   :  { %2059 = vadd.xlane.f32.xlu1 %v2058_v48 }
0x1472   :  { %v4238_v46 = vpop.eup %4237 }
0x1473   :  { %v2258_v14 = vsel %vm340_vm5, %v4238_v46, 0.0 }
0x1474   :  { %2259 = vadd.xlane.f32.xlu1 %v2258_v14 }
0x1476   :  { %v4240_v15 = vpop.eup %4239 }
0x1477   :  { %v2261_v58 = vsel %vm340_vm5, %v4240_v15, 0.0 }
0x1478   :  { %2262 = vadd.xlane.f32.xlu0 %v2261_v58 }
0x1485   :  { %2268 = vrot.lane.b32.xlu1 %v4838_v37, %s5199_s28 }
0x148e   :  { %2068 = vrot.lane.b32.xlu0 %v4838_v37, %s4311_s0 }
0x14f7   :  { %v2063_v17 = vpop.xlane.xlu0 %2062 }
0x14f8   :  { %4241 = vrcp.f32 %v2063_v17 }
0x14f9   :  { %v2060_v18 = vpop.xlane.xlu1 %2059 }
0x14fa   :  { %4243 = vrcp.f32 %v2060_v18  ;;  %v3586_v18 = vld [vmem:[%s5157_s11 + $0x1] ss:$0 sm:$0xff] }
0x14fd   :  { %v2260_v19 = vpop.xlane.xlu1 %2259 }
0x14fe   :  { %4245 = vrcp.f32 %v2260_v19 }
0x1501   :  { %v2263_v20 = vpop.xlane.xlu0 %2262  ;;  %v2269_v27 = vpop.permute.xlu1 %2268 }
0x1502   :  { %4247 = vrcp.f32 %v2263_v20 }
0x1505   :  { %v2069_v21 = vpop.permute.xlu0 %2068  ;;  %v4242_v22 = vpop.eup %4241 }
0x1506   :  { %4033 = vmatprep.subr.mxu0 %v2069_v21  ;;  %v2067_v25 = vmul.f32 %v4242_v22, %v4234_v11 }
0x1507   :  { %v4244_v23 = vpop.eup %4243  ;;  %4034 = vmatpush3.msra.mxu0 %v2069_v21 }
0x1508   :  { %4045 = vmatprep.subr.mxu0 %v2271_v16  ;;  %v2066_v24 = vmul.f32 %v4244_v23, %v4236_v13 }
0x150a   :  { %4035 = vmatprep.mubr.msk.f32.mxu0 %vm340_vm5, %v2066_v24 }
0x150b   :  { %v4246_v26 = vpop.eup %4245  ;;  %4036 = vmatmul.mubr.msk.f32.vlgmr.msra.gmra.mxu0 %vm340_vm5, %v2067_v25 }
0x150c   :  { %4046 = vmatpush3.msra.mxu0 %v2271_v16  ;;  %v2266_v28 = vmul.f32 %v4246_v26, %v4238_v46  ;;  %v3585_v16 = vld [vmem:[%s5156_s10 + $0x1] ss:$0 sm:$0xff] }
0x150d   :  { %4047 = vmatprep.subr.mxu0 %v2269_v27 }
0x150e   :  { %4048 = vmatpush3.msra.mxu0 %v2269_v27  ;;  %4049 = vmatprep.mubr.msk.f32.mxu0 %vm340_vm5, %v2266_v28 }
0x150f   :  { %v4248_v29 = vpop.eup %4247  ;;  %4052 = vmatprep.subr.mxu0 %v3566_v31 }
0x1510   :  { %v2267_v30 = vmul.f32 %v4248_v29, %v4240_v15 }
0x1512   :  { %4050 = vmatmul.mubr.msk.f32.vlgmr.msra.gmra.mxu0 %vm340_vm5, %v2267_v30 }
0x1513   :  { %4053 = vmatpush3.msra.mxu0 %v3566_v31 }
0x1514   :  { %4054 = vmatprep.subr.mxu0 %v3565_v32 }
0x1515   :  { %4055 = vmatpush3.msra.mxu0 %v3565_v32 }
0x1516   :  { %4056 = vmatprep.subr.mxu0 %v3564_v33 }
0x1517   :  { %4057 = vmatpush3.msra.mxu0 %v3564_v33  ;;  %v4990_v33 = vld [vmem:[%s5197_s26 + $0x8] sm:$0xff] }
0x1518   :  { %4058 = vmatprep.subr.mxu0 %v3563_v36 }
0x1519   :  { %4059 = vmatpush3.msra.mxu0 %v3563_v36 }
0x151a   :  { %4074 = vmatprep.subr.mxu0 %v3594_v45 }
0x15cb   :  { %v4037_v37 = vpop.f32.mrf.mxu0 }
0x15cd   :  { %v2146_v38 = vpop.f32.mrf.mxu0 }
0x15d2   :  { %v4051_v39 = vpop.f32.mrf.mxu0 }
0x15d3   :  { %2359 = vrot.lane.b32.xlu1 %v4051_v39, %s5200_s1 }
0x15d4   :  { %v2346_v40 = vpop.f32.mrf.mxu0 }
0x15d5   :  { %2357 = vrot.lane.b32.xlu0 %v2346_v40, %s5200_s1 }
0x1645   :  { %v2360_v41 = vpop.permute.xlu1 %2359 }
0x1646   :  { %v2364_v44 = vsel %vm340_vm5, %v4037_v37, %v2360_v41 }
0x1647   :  { %v2358_v42 = vpop.permute.xlu0 %2357 }
0x1648   :  { %v2363_v43 = vsel %vm340_vm5, %v2146_v38, %v2358_v42  ;;  %v4996_v38 = vld [vmem:[%s5197_s26] sm:$0xff] }
0x1649   :  { %4060 = vmatprep.mubr.msk.f32.mxu0 %vm188_vm4, %v2363_v43 }
0x164a   :  { %4061 = vmatmul.mubr.msk.f32.vlgmr.msra.gmra.mxu0 %vm188_vm4, %v2364_v44 }
0x164b   :  { %4082 = vmatprep.mubr.msk.f32.mxu0 %vm188_vm4, %v4595_v57  ;;  %4075 = vmatpush3.msra.mxu0 %v3594_v45 }
0x164c   :  { %4076 = vmatprep.subr.mxu0 %v3593_v47 }
0x164d   :  { %4077 = vmatpush3.msra.mxu0 %v3593_v47 }
0x164e   :  { %4078 = vmatprep.subr.mxu0 %v3592_v49 }
0x164f   :  { %4079 = vmatpush3.msra.mxu0 %v3592_v49 }
0x170a   :  { %v4062_v50 = vpop.f32.mrf.mxu0 }
0x170b   :  { %v2443_v57 = vadd.f32 %v4062_v50, %v4831_v35  ;;  %v3591_v35 = vld [vmem:[%s5159_s13 + $0x20] sm:$0xff] }
0x170c   :  { %v2437_v51 = vpop.f32.mrf.mxu0  ;;  %4080 = vmatprep.subr.mxu0 %v3591_v35 }
0x170d   :  { %v2438_v53 = vadd.f32 %v2437_v51, %v4829_v34  ;;  %v2449_v54 = vsel %vm188_vm4, %v2443_v57, 0.0  ;;  %v2453_v59 = vmul.f32 %v2443_v57, %v2443_v57  ;;  %4081 = vmatpush3.msra.mxu0 %v3591_v35  ;;  %v4279_v34 = vld [vmem:[%s5196_s30 + $0x8] sm:$0xff] }
0x170e   :  { %2450 = vadd.xlane.f32.xlu1 %v2449_v54  ;;  %4083 = vmatmul.mubr.msk.f32.vlgmr.msra.gmra.mxu0 %vm188_vm4, %v4279_v34 }
0x170f   :  { %v2446_v55 = vsel %vm188_vm4, %v2438_v53, 0.0  ;;  %v2452_v56 = vmul.f32 %v2438_v53, %v2438_v53  ;;  %v2457_v60 = vsel %vm188_vm4, %v2453_v59, 0.0  ;;  %4085 = vmatprep.mubr.msk.f32.mxu0 %vm188_vm4, %v4280_v61 }
0x1710   :  { %2447 = vadd.xlane.f32.xlu0 %v2446_v55 }
0x1711   :  { %v2454_v52 = vsel %vm188_vm4, %v2452_v56, 0.0 }
0x1712   :  { %4086 = vmatmul.mubr.msk.f32.gmra.mxu0 %vm188_vm4, %v4281_v62 }
0x1714   :  { %2455 = vadd.xlane.f32.xlu0 %v2454_v52 }
0x1718   :  { %2458 = vadd.xlane.f32.xlu0 %v2457_v60 }
0x1797   :  { %v2451_v5 = vpop.xlane.xlu1 %2450 }
0x1798   :  { %v2461_v7 = vmul.f32 0.03125, %v2451_v5 }
0x1799   :  { %v2448_v3 = vpop.xlane.xlu0 %2447 }
0x179a   :  { %v2460_v4 = vmul.f32 0.03125, %v2448_v3  ;;  %v2465_v12 = vmul.f32 %v2461_v7, %v2461_v7  ;;  %v2469_v19 = vsub.f32 %v2443_v57, %v2461_v7 }
0x179c   :  { %v2464_v8 = vmul.f32 %v2460_v4, %v2460_v4  ;;  %v2468_v15 = vsub.f32 %v2438_v53, %v2460_v4 }
0x179d   :  { %v2456_v6 = vpop.xlane.xlu0 %2455 }
0x179e   :  { %v2462_v9 = vmul.f32 0.03125, %v2456_v6 }
0x17a0   :  { %v2466_v10 = vsub.f32 %v2462_v9, %v2464_v8 }
0x17a1   :  { %v2459_v11 = vpop.xlane.xlu0 %2458 }
0x17a2   :  { %v2470_v13 = vadd.f32 1e-06, %v2466_v10  ;;  %v2463_v48 = vmul.f32 0.03125, %v2459_v11 }
0x17a4   :  { %4249 = vrsqrt.f32 %v2470_v13  ;;  %v2467_v46 = vsub.f32 %v2463_v48, %v2465_v12 }
0x17a6   :  { %v2471_v14 = vadd.f32 1e-06, %v2467_v46 }
0x17a8   :  { %4251 = vrsqrt.f32 %v2471_v14 }
0x17b1   :  { %v4250_v58 = vpop.eup %4249 }
0x17b2   :  { %v2474_v17 = vmul.f32 %v4250_v58, %v2468_v15 }
0x17b4   :  { %v2482_v20 = vmul.f32 %v3585_v16, %v2474_v17 }
0x17b5   :  { %v4252_v21 = vpop.eup %4251 }
0x17b6   :  { %v2475_v22 = vmul.f32 %v4252_v21, %v2469_v19  ;;  %v4953_v23 = vadd.f32 %v3586_v18, %v2482_v20 }
0x17b8   :  { %v2483_v24 = vmul.f32 %v3585_v16, %v2475_v22  ;;  %4071 = vmatprep.mubr.msk.f32.mxu1 %vm188_vm4, %v4953_v23 }
0x17ba   :  { %v4957_v25 = vadd.f32 %v3586_v18, %v2483_v24 }
0x17bc   :  { %4072 = vmatmul.mubr.msk.f32.vlgmr.msra.gmra.mxu1 %vm188_vm4, %v4957_v25 }
0x17ce   :  { %v4961_v26 = vpop.f32.mrf.mxu0 }
0x17d0   :  { %v4963_v27 = vpop.f32.mrf.mxu0 }
0x17d2   :  { %v4965_v28 = vpop.f32.mrf.mxu0 }
0x17d3   :  { %4088 = vmatprep.subr.msk.mxu1 %vm340_vm5, %v4965_v28 }
0x17d4   :  { %4089 = vmatpush3.xpose.msk.msra.mxu1 %vm340_vm5, %v4965_v28  ;;  %v4971_v29 = vpop.f32.mrf.mxu0 }
0x17d5   :  { %4090 = vmatprep.subr.msk.mxu1 %vm340_vm5, %v4971_v29 }
0x17d8   :  { %4091 = vmatpush3.xpose.msk.msra.mxu1 %vm340_vm5, %v4971_v29 }
0x17d9   :  { %4092 = vmatprep.subr.msk.mxu1 %vm340_vm5, %v4961_v26 }
0x17dc   :  { %4093 = vmatpush3.xpose.msk.msra.mxu1 %vm340_vm5, %v4961_v26 }
0x17dd   :  { %4094 = vmatprep.subr.msk.mxu1 %vm340_vm5, %v4963_v27 }
0x17e0   :  { %4095 = vmatpush3.xpose.msk.msra.mxu1 %vm340_vm5, %v4963_v27 }
0x187c   :  { %v4073_v30 = vpop.f32.mrf.mxu1 }
0x187e   :  { %v2583_v31 = vpop.f32.mrf.mxu1 }
0x187f   :  { %4096 = vmatprep.mubr.msk.f32.mxu1 %vm340_vm5, %v2583_v31 }
0x1880   :  { %4097 = vmatmul.mubr.msk.f32.vlgmr.msra.gmra.mxu1 %vm340_vm5, %v4073_v30 }
0x1940   :  { %v4098_v32 = vpop.f32.mrf.mxu1 }
0x1941   :  { %v2767_v36 = vadd.f32 %v4990_v33, %v4098_v32 }
0x1942   :  { %v2761_v37 = vpop.f32.mrf.mxu1 }
0x1943   :  { %v2762_v39 = vadd.f32 %v4996_v38, %v2761_v37  ;;  %v2773_v40 = vsel %vm188_vm4, %v2767_v36, -inf  ;;  %v3595_v37 = vld [vmem:[%s5160_s14 + $0x20] sm:$0xff] }
0x1944   :  { %2774 = vmax.xlane.f32.xlu0 %v2773_v40 }
0x1945   :  { %v2770_v41 = vsel %vm188_vm4, %v2762_v39, -inf }
0x1946   :  { %2771 = vmax.xlane.f32.xlu1 %v2770_v41 }
0x1957   :  { %2798 = vrot.lane.b32.xlu1 %v4965_v28, %s4308_s18 }
0x195a   :  { %2796 = vrot.lane.b32.xlu0 %v4971_v29, %s4308_s18 }
0x195b   :  { %2794 = vrot.lane.b32.xlu1 %v4961_v26, %s4308_s18 }
0x195f   :  { %2792 = vrot.lane.b32.xlu1 %v4963_v27, %s4308_s18 }
0x19cd   :  { %v2775_v42 = vpop.xlane.xlu0 %2774 }
0x19ce   :  { %v2777_v43 = vsub.f32 %v2767_v36, %v2775_v42  ;;  %v3596_v36 = vld [vmem:[%s5160_s14 + $0x28] sm:$0xff] }
0x19cf   :  { %v2772_v44 = vpop.xlane.xlu1 %2771 }
0x19d0   :  { %v2780_v45 = vmul.f32 1.442695, %v2777_v43  ;;  %v2776_v47 = vsub.f32 %v2762_v39, %v2772_v44 }
0x19d1   :  { %v2797_v57 = vpop.permute.xlu0 %2796 }
0x19d2   :  { %4253 = vpow2.f32 %v2780_v45  ;;  %v2778_v49 = vmul.f32 1.442695, %v2776_v47 }
0x19d3   :  { %v2799_v50 = vpop.permute.xlu1 %2798 }
0x19d4   :  { %4255 = vpow2.f32 %v2778_v49  ;;  %4099 = vmatprep.subr.mxu0 %v2799_v50 }
0x19d5   :  { %4100 = vmatpush3.msra.mxu0 %v2799_v50 }
0x19d6   :  { %4101 = vmatprep.subr.mxu0 %v2797_v57 }
0x19d7   :  { %4102 = vmatpush3.msra.mxu0 %v2797_v57  ;;  %v2795_v51 = vpop.permute.xlu1 %2794 }
0x19d8   :  { %4103 = vmatprep.subr.mxu0 %v2795_v51 }
0x19d9   :  { %4104 = vmatpush3.msra.mxu0 %v2795_v51 }
0x19db   :  { %v2793_v53 = vpop.permute.xlu1 %2792 }
0x19dc   :  { %4105 = vmatprep.subr.mxu0 %v2793_v53 }
0x19dd   :  { %4106 = vmatpush3.msra.mxu0 %v2793_v53 }
0x19df   :  { %v4254_v54 = vpop.eup %4253 }
0x19e0   :  { %v2785_v55 = vsel %vm188_vm4, %v4254_v54, 0.0 }
0x19e1   :  { %v4256_v56 = vpop.eup %4255  ;;  %2786 = vadd.xlane.f32.xlu0 %v2785_v55 }
0x19e2   :  { %v2782_v52 = vsel %vm188_vm4, %v4256_v56, 0.0 }
0x19e3   :  { %2783 = vadd.xlane.f32.xlu1 %v2782_v52  ;;  %v3627_v52 = vld [vmem:[%s5163_s17 + $0x20] sm:$0xff] }
0x19f4   :  { %2893 = vrot.lane.b32.xlu1 %v4971_v29, %s4309_s2 }
0x19f7   :  { %2895 = vrot.lane.b32.xlu0 %v4965_v28, %s4309_s2 }
0x19f8   :  { %2889 = vrot.lane.b32.xlu1 %v4963_v27, %s4309_s2 }
0x19fb   :  { %2891 = vrot.lane.b32.xlu0 %v4961_v26, %s4309_s2 }
0x19fc   :  { %2887 = vrot.lane.b32.xlu1 %v4073_v30, %s4309_s2 }
0x19ff   :  { %2885 = vrot.lane.b32.xlu0 %v2583_v31, %s4309_s2 }
0x1a6a   :  { %v2787_v59 = vpop.xlane.xlu0 %2786 }
0x1a6b   :  { %4257 = vrcp.f32 %v2787_v59  ;;  %v3639_v59 = vld [vmem:[%s5165_s19 + $0x78] sm:$0xff] }
0x1a6c   :  { %v2784_v60 = vpop.xlane.xlu1 %2783 }
0x1a6d   :  { %4259 = vrcp.f32 %v2784_v60  ;;  %v3638_v60 = vld [vmem:[%s5165_s19 + $0x70] sm:$0xff] }
0x1a6e   :  { %v2896_v35 = vpop.permute.xlu0 %2895 }
0x1a6f   :  { %4110 = vmatprep.subr.msk.mxu0 %vm340_vm5, %v2896_v35 }
0x1a70   :  { %v2894_v2 = vpop.permute.xlu1 %2893 }
0x1a72   :  { %v2892_v34 = vpop.permute.xlu0 %2891 }
0x1a74   :  { %v2890_v3 = vpop.permute.xlu1 %2889 }
0x1a76   :  { %v2886_v1 = vpop.permute.xlu0 %2885 }
0x1a78   :  { %v4258_v61 = vpop.eup %4257  ;;  %v2888_v4 = vpop.permute.xlu1 %2887 }
0x1a79   :  { %v2791_v0 = vmul.f32 %v4258_v61, %v4254_v54 }
0x1a7a   :  { %v4260_v62 = vpop.eup %4259 }
0x1a7b   :  { %v2790_v63 = vmul.f32 %v4260_v62, %v4256_v56  ;;  %v3628_v56 = vld [vmem:[%s5163_s17 + $0x28] sm:$0xff] }
0x1a7d   :  { %4107 = vmatprep.mubr.msk.f32.mxu0 %vm188_vm4, %v2790_v63 }
0x1a7e   :  { %4108 = vmatmul.mubr.msk.f32.vlgmr.msra.gmra.mxu0 %vm188_vm4, %v2791_v0 }
0x1a7f   :  { %4111 = vmatpush3.xpose.msk.msra.mxu0 %vm340_vm5, %v2896_v35  ;;  %4118 = vmatprep.mubr.msk.f32.mxu0 %vm340_vm5, %v2886_v1  ;;  %v3637_v35 = vld [vmem:[%s5165_s19 + $0x68] sm:$0xff] }
0x1a80   :  { %4112 = vmatprep.subr.msk.mxu0 %vm340_vm5, %v2894_v2 }
0x1a83   :  { %4113 = vmatpush3.xpose.msk.msra.mxu0 %vm340_vm5, %v2894_v2 }
0x1a84   :  { %4114 = vmatprep.subr.msk.mxu0 %vm340_vm5, %v2892_v34 }
0x1a87   :  { %4115 = vmatpush3.xpose.msk.msra.mxu0 %vm340_vm5, %v2892_v34  ;;  %v3636_v34 = vld [vmem:[%s5165_s19 + $0x60] sm:$0xff] }
0x1a88   :  { %4116 = vmatprep.subr.msk.mxu0 %vm340_vm5, %v2890_v3 }
0x1a8b   :  { %4117 = vmatpush3.xpose.msk.msra.mxu0 %vm340_vm5, %v2890_v3 }
0x1a8e   :  { %4119 = vmatmul.mubr.msk.f32.vlgmr.msra.gmra.mxu0 %vm340_vm5, %v2888_v4 }
0x1b3e   :  { %v5033_v5 = vpop.f32.mrf.mxu0 }
0x1b40   :  { %v5035_v6 = vpop.f32.mrf.mxu0 }
0x1b4e   :  { %v4120_v7 = vpop.f32.mrf.mxu0 }
0x1b4f   :  { %v2981_v8 = vadd.f32 %v4990_v33, %v4120_v7  ;;  %v3597_v33 = vld [vmem:[%s5160_s14 + $0x30] sm:$0xff] }
0x1b50   :  { %v2975_v9 = vpop.f32.mrf.mxu0 }
0x1b51   :  { %v2976_v10 = vadd.f32 %v4996_v38, %v2975_v9  ;;  %v2987_v11 = vsel %vm188_vm4, %v2981_v8, -inf }
0x1b52   :  { %2988 = vmax.xlane.f32.xlu1 %v2987_v11 }
0x1b53   :  { %v2984_v12 = vsel %vm188_vm4, %v2976_v10, -inf }
0x1b54   :  { %2985 = vmax.xlane.f32.xlu0 %v2984_v12 }
0x1b63   :  { %3012 = vrot.lane.b32.xlu1 %v4965_v28, %s4310_s6 }
0x1b67   :  { %3008 = vrot.lane.b32.xlu1 %v4961_v26, %s4310_s6 }
0x1b6b   :  { %3006 = vrot.lane.b32.xlu1 %v4963_v27, %s4310_s6 }
0x1bdb   :  { %v2989_v13 = vpop.xlane.xlu1 %2988 }
0x1bdc   :  { %v2991_v48 = vsub.f32 %v2981_v8, %v2989_v13  ;;  %v3625_v13 = vld [vmem:[%s5161_s15 + $0x1] ss:$0 sm:$0xff] }
0x1bdd   :  { %v2986_v46 = vpop.xlane.xlu0 %2985 }
0x1bde   :  { %v2994_v14 = vmul.f32 1.442695, %v2991_v48  ;;  %v2990_v15 = vsub.f32 %v2976_v10, %v2986_v46  ;;  %v3626_v46 = vld [vmem:[%s5162_s16 + $0x1] ss:$0 sm:$0xff] }
0x1bdf   :  { %v3013_v58 = vpop.permute.xlu1 %3012 }
0x1be0   :  { %4261 = vpow2.f32 %v2994_v14  ;;  %v2992_v16 = vmul.f32 1.442695, %v2990_v15  ;;  %4121 = vmatprep.subr.mxu1 %v3013_v58 }
0x1be1   :  { %4122 = vmatpush3.msra.mxu1 %v3013_v58 }
0x1be2   :  { %4263 = vpow2.f32 %v2992_v16 }
0x1be3   :  { %v3009_v24 = vpop.permute.xlu1 %3008 }
0x1be7   :  { %v3007_v27 = vpop.permute.xlu1 %3006 }
0x1bed   :  { %v4262_v17 = vpop.eup %4261 }
0x1bee   :  { %v2999_v18 = vsel %vm188_vm4, %v4262_v17, 0.0 }
0x1bef   :  { %v4264_v19 = vpop.eup %4263  ;;  %3000 = vadd.xlane.f32.xlu0 %v2999_v18 }
0x1bf0   :  { %v2996_v20 = vsel %vm188_vm4, %v4264_v19, 0.0 }
0x1bf3   :  { %2997 = vadd.xlane.f32.xlu0 %v2996_v20  ;;  %v3635_v20 = vld [vmem:[%s5165_s19 + $0x58] sm:$0xff] }
0x1c09   :  { %3010 = vrot.lane.b32.xlu0 %v4971_v29, %s4310_s6  ;;  %v3598_v29 = vld [vmem:[%s5160_s14 + $0x38] sm:$0xff] }
0x1c78   :  { %v3001_v21 = vpop.xlane.xlu0 %3000 }
0x1c79   :  { %4265 = vrcp.f32 %v3001_v21  ;;  %v3634_v21 = vld [vmem:[%s5165_s19 + $0x50] sm:$0xff] }
0x1c7c   :  { %v2998_v22 = vpop.xlane.xlu0 %2997 }
0x1c7d   :  { %4267 = vrcp.f32 %v2998_v22  ;;  %v3633_v22 = vld [vmem:[%s5165_s19 + $0x48] sm:$0xff] }
0x1c80   :  { %v3011_v26 = vpop.permute.xlu0 %3010 }
0x1c81   :  { %4123 = vmatprep.subr.mxu1 %v3011_v26 }
0x1c82   :  { %4124 = vmatpush3.msra.mxu1 %v3011_v26  ;;  %v3643_v26 = vld [vmem:[%s5198_s29 + $0x1] ss:$0 sm:$0xff] }
0x1c83   :  { %4125 = vmatprep.subr.mxu1 %v3009_v24 }
0x1c84   :  { %4126 = vmatpush3.msra.mxu1 %v3009_v24  ;;  %v3632_v24 = vld [vmem:[%s5165_s19 + $0x40] sm:$0xff] }
0x1c85   :  { %4127 = vmatprep.subr.mxu1 %v3007_v27 }
0x1c86   :  { %4128 = vmatpush3.msra.mxu1 %v3007_v27  ;;  %v4266_v28 = vpop.eup %4265 }
0x1c87   :  { %v3005_v32 = vmul.f32 %v4266_v28, %v4262_v17  ;;  %4132 = vmatprep.subr.mxu1 %v3598_v29 }
0x1c8a   :  { %v4268_v30 = vpop.eup %4267 }
0x1c8b   :  { %v3004_v31 = vmul.f32 %v4268_v30, %v4264_v19 }
0x1c8d   :  { %4129 = vmatprep.mubr.msk.f32.mxu1 %vm188_vm4, %v3004_v31 }
0x1c8e   :  { %4130 = vmatmul.mubr.msk.f32.vlgmr.msra.gmra.mxu1 %vm188_vm4, %v3005_v32 }
0x1c8f   :  { %4133 = vmatpush3.msra.mxu1 %v3598_v29 }
0x1c90   :  { %4134 = vmatprep.subr.mxu1 %v3597_v33 }
0x1c91   :  { %4135 = vmatpush3.msra.mxu1 %v3597_v33  ;;  %v3646_v33 = vld [vmem:[%s5166_s20 + $0x1] ss:$0 sm:$0xff] }
0x1c92   :  { %4136 = vmatprep.subr.mxu1 %v3596_v36 }
0x1c93   :  { %4137 = vmatpush3.msra.mxu1 %v3596_v36 }
0x1c94   :  { %4138 = vmatprep.subr.mxu1 %v3595_v37 }
0x1c95   :  { %4139 = vmatpush3.msra.mxu1 %v3595_v37 }
0x1c96   :  { %4154 = vmatprep.subr.mxu1 %v3639_v59 }
0x1d4e   :  { %v4131_v38 = vpop.f32.mrf.mxu1 }
0x1d4f   :  { %3103 = vrot.lane.b32.xlu1 %v4131_v38, %s5200_s1 }
0x1d50   :  { %v3090_v39 = vpop.f32.mrf.mxu1 }
0x1d51   :  { %3101 = vrot.lane.b32.xlu0 %v3090_v39, %s5200_s1 }
0x1dc1   :  { %v3104_v40 = vpop.permute.xlu1 %3103 }
0x1dc2   :  { %v3108_v43 = vsel %vm340_vm5, %v5033_v5, %v3104_v40 }
0x1dc3   :  { %v3102_v41 = vpop.permute.xlu0 %3101 }
0x1dc4   :  { %v3107_v42 = vsel %vm340_vm5, %v5035_v6, %v3102_v41 }
0x1dc5   :  { %4140 = vmatprep.mubr.msk.f32.mxu1 %vm188_vm4, %v3107_v42 }
0x1dc6   :  { %4141 = vmatmul.mubr.msk.f32.vlgmr.msra.gmra.mxu1 %vm188_vm4, %v3108_v43 }
0x1dc7   :  { %4155 = vmatpush3.msra.mxu1 %v3639_v59 }
0x1dc8   :  { %4156 = vmatprep.subr.mxu1 %v3638_v60 }
0x1dc9   :  { %4157 = vmatpush3.msra.mxu1 %v3638_v60 }
0x1dca   :  { %4158 = vmatprep.subr.mxu1 %v3637_v35 }
0x1dcb   :  { %4159 = vmatpush3.msra.mxu1 %v3637_v35 }
0x1dcc   :  { %4160 = vmatprep.subr.mxu1 %v3636_v34 }
0x1dcd   :  { %4161 = vmatpush3.msra.mxu1 %v3636_v34 }
0x1dce   :  { %4162 = vmatprep.subr.mxu1 %v3635_v20 }
0x1dcf   :  { %4163 = vmatpush3.msra.mxu1 %v3635_v20 }
0x1dd0   :  { %4164 = vmatprep.subr.mxu1 %v3634_v21 }
0x1dd1   :  { %4165 = vmatpush3.msra.mxu1 %v3634_v21 }
0x1dd2   :  { %4166 = vmatprep.subr.mxu1 %v3633_v22 }
0x1dd3   :  { %4167 = vmatpush3.msra.mxu1 %v3633_v22 }
0x1dd4   :  { %4168 = vmatprep.subr.mxu1 %v3632_v24 }
0x1dd5   :  { %4169 = vmatpush3.msra.mxu1 %v3632_v24 }
0x1e86   :  { %v4142_v44 = vpop.f32.mrf.mxu1 }
0x1e87   :  { %v3187_v45 = vadd.f32 %v4142_v44, %v4957_v25  ;;  %v3630_v25 = vld [vmem:[%s5163_s17 + $0x38] sm:$0xff] }
0x1e88   :  { %v3181_v47 = vpop.f32.mrf.mxu1  ;;  %4143 = vmatprep.subr.mxu0 %v3630_v25 }
0x1e89   :  { %v3182_v49 = vadd.f32 %v3181_v47, %v4953_v23  ;;  %v3193_v50 = vsel %vm188_vm4, %v3187_v45, 0.0  ;;  %v3197_v54 = vmul.f32 %v3187_v45, %v3187_v45  ;;  %v3629_v23 = vld [vmem:[%s5163_s17 + $0x30] sm:$0xff]  ;;  %4144 = vmatpush3.msra.mxu0 %v3630_v25 }
0x1e8a   :  { %3194 = vadd.xlane.f32.xlu1 %v3193_v50  ;;  %4145 = vmatprep.subr.mxu0 %v3629_v23 }
0x1e8b   :  { %v3190_v57 = vsel %vm188_vm4, %v3182_v49, 0.0  ;;  %v3196_v51 = vmul.f32 %v3182_v49, %v3182_v49  ;;  %v3201_v55 = vsel %vm188_vm4, %v3197_v54, 0.0  ;;  %4146 = vmatpush3.msra.mxu0 %v3629_v23 }
0x1e8c   :  { %3191 = vadd.xlane.f32.xlu0 %v3190_v57  ;;  %4147 = vmatprep.subr.mxu0 %v3628_v56 }
0x1e8d   :  { %v3198_v53 = vsel %vm188_vm4, %v3196_v51, 0.0  ;;  %4148 = vmatpush3.msra.mxu0 %v3628_v56 }
0x1e8e   :  { %4149 = vmatprep.subr.mxu0 %v3627_v52 }
0x1e8f   :  { %4150 = vmatpush3.msra.mxu0 %v3627_v52 }
0x1e90   :  { %3199 = vadd.xlane.f32.xlu0 %v3198_v53 }
0x1e94   :  { %3202 = vadd.xlane.f32.xlu0 %v3201_v55 }
0x1f13   :  { %v3195_v63 = vpop.xlane.xlu1 %3194 }
0x1f14   :  { %v3205_v1 = vmul.f32 0.03125, %v3195_v63  ;;  %v3649_v63 = vld [vmem:[%s5167_s21 + $0x1] ss:$0 sm:$0xff]  ;;  %s4284_s21 = scalar_lea.vmem %s3490_s9, 256 }
0x1f15   :  { %v3192_v61 = vpop.xlane.xlu0 %3191  ;;  %p4285_p0 = scmp.ne.s32.totalorder %s3490_s9, %s4284_s21  ;;  %p4290_p2 = scmp.lt.s32.totalorder %s4284_s21, %s4284_s21 }
0x1f16   :  { %v3204_v62 = vmul.f32 0.03125, %v3192_v61  ;;  %v3209_v6 = vmul.f32 %v3205_v1, %v3205_v1  ;;  %v3213_v14 = vsub.f32 %v3187_v45, %v3205_v1 }
0x1f17   :  { %p4291_p3 = por %p4290_p2, %p4289_p1 }
0x1f18   :  { %v3208_v2 = vmul.f32 %v3204_v62, %v3204_v62  ;;  %v3212_v11 = vsub.f32 %v3182_v49, %v3204_v62 }
0x1f19   :  { %v3200_v0 = vpop.xlane.xlu0 %3199  ;;  %p4292_p4 = pnand %p4291_p3, %p4285_p0 }
0x1f1a   :  { %v3206_v3 = vmul.f32 0.03125, %v3200_v0 }
0x1f1c   :  { %v3210_v4 = vsub.f32 %v3206_v3, %v3208_v2  ;;  %v3650_v3 = vld [vmem:[%s5168_s22 + $0x1] ss:$0 sm:$0xff] }
0x1f1d   :  { %v3203_v5 = vpop.xlane.xlu0 %3202 }
0x1f1e   :  { %v3214_v7 = vadd.f32 1e-06, %v3210_v4  ;;  %v3207_v8 = vmul.f32 0.03125, %v3203_v5 }
0x1f20   :  { %4269 = vrsqrt.f32 %v3214_v7  ;;  %v3211_v9 = vsub.f32 %v3207_v8, %v3209_v6 }
0x1f22   :  { %v3215_v10 = vadd.f32 1e-06, %v3211_v9 }
0x1f24   :  { %4271 = vrsqrt.f32 %v3215_v10 }
0x1f2d   :  { %v4270_v12 = vpop.eup %4269 }
0x1f2e   :  { %v3218_v48 = vmul.f32 %v4270_v12, %v3212_v11 }
0x1f30   :  { %v3226_v15 = vmul.f32 %v3625_v13, %v3218_v48 }
0x1f31   :  { %v4272_v58 = vpop.eup %4271 }
0x1f32   :  { %v3219_v16 = vmul.f32 %v4272_v58, %v3213_v14  ;;  %v3234_v17 = vadd.f32 %v3626_v46, %v3226_v15 }
0x1f34   :  { %v3227_v18 = vmul.f32 %v3625_v13, %v3219_v16  ;;  %4151 = vmatprep.mubr.msk.f32.mxu0 %vm188_vm4, %v3234_v17 }
0x1f36   :  { %v3235_v19 = vadd.f32 %v3626_v46, %v3227_v18 }
0x1f38   :  { %4152 = vmatmul.mubr.msk.f32.vlgmr.msra.gmra.mxu0 %vm188_vm4, %v3235_v19 }
0x1ff8   :  { %v4153_v27 = vpop.f32.mrf.mxu0 }
0x1ff9   :  { %v3342_v28 = vadd.f32 %v4153_v27, %v3643_v26 }
0x1ffa   :  { %v3336_v30 = vpop.f32.mrf.mxu0 }
0x1ffb   :  { %v3337_v31 = vadd.f32 %v3643_v26, %v3336_v30  ;;  %v3346_v29 = vmax.f32 %v3342_v28, 0.0 }
0x1ffd   :  { %v3345_v32 = vmax.f32 %v3337_v31, 0.0 }
0x1fff   :  { %4170 = vmatprep.mubr.msk.f32.mxu1 %vm1732_vm6, %v3345_v32 }
0x2000   :  { %4171 = vmatmul.mubr.msk.f32.vlgmr.msra.gmra.mxu1 %vm1732_vm6, %v3346_v29 }
0x20c0   :  { %v4172_v36 = vpop.f32.mrf.mxu1 }
0x20c1   :  { %v3431_v37 = vadd.f32 %v4172_v36, %v3646_v33 }
0x20c2   :  { %v3425_v38 = vpop.f32.mrf.mxu1 }
0x20c3   :  { %v3435_v39 = vadd.f32 %v3431_v37, %v3235_v19  ;;  %v3426_v40 = vadd.f32 %v3646_v33, %v3425_v38 }
0x20c5   :  { %v3434_v41 = vadd.f32 %v3426_v40, %v3234_v17  ;;  %v3439_v42 = vsel %vm188_vm4, %v3435_v39, 0.0  ;;  %v3443_v43 = vmul.f32 %v3435_v39, %v3435_v39 }
0x20c6   :  { %3440 = vadd.xlane.f32.xlu0 %v3439_v42 }
0x20c7   :  { %v3436_v44 = vsel %vm188_vm4, %v3434_v41, 0.0  ;;  %v3442_v45 = vmul.f32 %v3434_v41, %v3434_v41  ;;  %v3447_v47 = vsel %vm188_vm4, %v3443_v43, 0.0 }
0x20c8   :  { %3437 = vadd.xlane.f32.xlu1 %v3436_v44 }
0x20c9   :  { %v3444_v49 = vsel %vm188_vm4, %v3442_v45, 0.0 }
0x20ca   :  { %3448 = vadd.xlane.f32.xlu0 %v3447_v47 }
0x20cc   :  { %3445 = vadd.xlane.f32.xlu1 %v3444_v49 }
0x214f   :  { %v3441_v50 = vpop.xlane.xlu0 %3440 }
0x2150   :  { %v3451_v57 = vmul.f32 0.03125, %v3441_v50 }
0x2151   :  { %v3438_v51 = vpop.xlane.xlu1 %3437 }
0x2152   :  { %v3450_v53 = vmul.f32 0.03125, %v3438_v51  ;;  %v3455_v55 = vmul.f32 %v3451_v57, %v3451_v57  ;;  %v3459_v61 = vsub.f32 %v3435_v39, %v3451_v57 }
0x2153   :  { %v3449_v54 = vpop.xlane.xlu0 %3448 }
0x2154   :  { %v3453_v25 = vmul.f32 0.03125, %v3449_v54  ;;  %v3454_v56 = vmul.f32 %v3450_v53, %v3450_v53  ;;  %v3458_v0 = vsub.f32 %v3434_v41, %v3450_v53 }
0x2155   :  { %v3446_v23 = vpop.xlane.xlu1 %3445 }
0x2156   :  { %v3457_v52 = vsub.f32 %v3453_v25, %v3455_v55  ;;  %v3452_v59 = vmul.f32 0.03125, %v3446_v23 }
0x2158   :  { %v3461_v60 = vadd.f32 1e-06, %v3457_v52  ;;  %v3456_v35 = vsub.f32 %v3452_v59, %v3454_v56 }
0x215a   :  { %4273 = vrsqrt.f32 %v3461_v60  ;;  %v3460_v34 = vadd.f32 1e-06, %v3456_v35 }
0x215c   :  { %4275 = vrsqrt.f32 %v3460_v34 }
0x2167   :  { %v4274_v62 = vpop.eup %4273 }
0x2168   :  { %v3465_v1 = vmul.f32 %v4274_v62, %v3459_v61 }
0x2169   :  { %v4276_v2 = vpop.eup %4275 }
0x216a   :  { %v3464_v4 = vmul.f32 %v4276_v2, %v3458_v0  ;;  %v3473_v5 = vmul.f32 %v3649_v63, %v3465_v1 }
0x216c   :  { %v3472_v6 = vmul.f32 %v3649_v63, %v3464_v4  ;;  %v3481_v7 = vadd.f32 %v3650_v3, %v3473_v5 }
0x216e   :  { %v3480_v8 = vadd.f32 %v3650_v3, %v3472_v6  ;;  %3483 = vst.msk [vmem:[#allocation2 + $0x8] sm:$0xff] %vm188_vm4, %v3481_v7 }
0x2170   :  { %3482 = vst.msk [vmem:[#allocation2] sm:$0xff] %vm188_vm4, %v3480_v8 }
0x2171   :  { %4295 = shalt.err (!%p4292_p4)
}
0x2172   :  { %s4315_s22 = smov 128   ;;  %s4316_s10 = smov 8  }
0x2173   :  { %3495 = dma.vmem_to_hbm [thread:$0]  %s3490_s9, 256, %s5169_s23, [#allocation3], %s4315_s22, %s4315_s22, %s4316_s10  }
0x2174   :  { %4304 = dma.done.wait [#allocation3], 256  }
0x2175   :  { %4305 = vsyncadd [#allocation3], 4294967040 }
0x2176   :  { %3499 = vsyncpa [#allocation3], 1 }

</bundles_post_ra>
